<compile_context>
chip_gen: v6e
topology: v6e:2x2x1
jax: 0.10.0
libtpu: 0.0.40
codegen_flags: <defaults>
</compile_context>

<pallas_src>
import functools

import jax
import jax.numpy as jnp
from jax.experimental import pallas as pl
from jax.experimental.pallas import tpu as pltpu


def _round_up(x, m):
    return ((x + m - 1) // m) * m


def _attention_kernel(q_ref, k_ref, v_ref,
                      wq_ref, wk_ref, wv_ref, wp_ref,
                      bq_ref, bk_ref, bv_ref, bp_ref,
                      out_ref,
                      kp_ref, vp_ref, ctx_ref,
                      *, scale, num_heads, head_dim):
    # Shapes per grid step (b, iq):
    #   q_ref            (1, tq, dim)  bf16 query tile
    #   k_ref / v_ref    (1, Nk, dim)  bf16 full key/value sequence of batch b
    #   wq/wk/wv/wp_ref  (dim, dim)    bf16 resident weights, already (in, out)
    #   bq/bk/bv/bp_ref  (1, dim)      f32 biases
    #   out_ref          (1, tq, dim)
    #   kp_ref / vp_ref  (Nk, dim)     bf16 scratch: projected K/V cached per batch
    #   ctx_ref          (tq, dim)     bf16 scratch: merged per-head context
    iq = pl.program_id(1)

    # Project K and V once per batch (first q-tile only); reuse for later q-tiles.
    @pl.when(iq == 0)
    def _():
        kp = jnp.dot(k_ref[0], wk_ref[...], preferred_element_type=jnp.float32)
        vp = jnp.dot(v_ref[0], wv_ref[...], preferred_element_type=jnp.float32)
        kp_ref[...] = (kp + bk_ref[...]).astype(kp_ref.dtype)
        vp_ref[...] = (vp + bv_ref[...]).astype(vp_ref.dtype)

    # Full-width query projection; fold the softmax scale in here (one pass over
    # (tq, dim) instead of H passes over (tq, Nk)).
    qp = jnp.dot(q_ref[0], wq_ref[...], preferred_element_type=jnp.float32)
    qp = ((qp + bq_ref[...]) * scale).astype(jnp.bfloat16)

    # Per-head attention; heads are static lane slices of the projected arrays.
    for h in range(num_heads):
        lo = h * head_dim
        hi = lo + head_dim
        qh = qp[:, lo:hi]                       # (tq, hd) bf16
        kh = kp_ref[:, lo:hi]                   # (Nk, hd) bf16
        vh = vp_ref[:, lo:hi]                   # (Nk, hd) bf16
        # scores = qh @ kh^T : contract head_dim of both operands, f32 accumulate.
        s = jax.lax.dot_general(qh, kh, (((1,), (1,)), ((), ())),
                                preferred_element_type=jnp.float32)
        # Numerically-stable softmax over keys (attn_drop is eval-mode identity).
        m = jnp.max(s, axis=-1, keepdims=True)
        p = jnp.exp(s - m)
        denom = jnp.sum(p, axis=-1, keepdims=True)
        ctx_h = jnp.dot(p.astype(jnp.bfloat16), vh,
                        preferred_element_type=jnp.float32)
        # Normalize the small (tq, hd) context; reciprocal runs on the EUP slot.
        ctx_h = ctx_h * pl.reciprocal(denom, approx=True)
        ctx_ref[:, lo:hi] = ctx_h.astype(ctx_ref.dtype)

    # Single dense output projection over the merged heads, plus proj bias.
    out = jnp.dot(ctx_ref[...], wp_ref[...], preferred_element_type=jnp.float32)
    out_ref[0] = (out + bp_ref[...]).astype(out_ref.dtype)


def attention_forward(q, k, v, params, *, num_heads, qk_scale=None, tq_max=256):
    """q: (B, N_q, dim), k/v: (B, N_k, dim).  Returns (B, N_q, dim)."""
    B, Nq, dim = q.shape
    Bk, Nk, dk = k.shape
    assert Bk == B and dk == dim and v.shape == k.shape
    assert dim % num_heads == 0
    hd = dim // num_heads
    scale = float(qk_scale) if qk_scale is not None else float(hd) ** -0.5

    # Query-length tiling: the q/out block's second-to-last dim must be a
    # multiple of 8 or the full (padded) extent.  (Lower tq_max to 128 on v5e
    # with very long Nk; raise toward 512 on v6e.)
    tq = min(_round_up(Nq, 8), tq_max)
    Nq_pad = _round_up(Nq, tq)
    q_in = q if Nq_pad == Nq else jnp.pad(q, ((0, 0), (0, Nq_pad - Nq), (0, 0)))

    # bf16 for all MXU operands; biases and softmax math stay f32.
    cdt = jnp.bfloat16
    q_in = q_in.astype(cdt)
    k_in = k.astype(cdt)
    v_in = v.astype(cdt)

    # PyTorch Linear is x @ W^T + b with W stored (out, in); pre-transpose once.
    wq_t = params["wq"].T.astype(cdt)
    wk_t = params["wk"].T.astype(cdt)
    wv_t = params["wv"].T.astype(cdt)
    wp_t = params["wp"].T.astype(cdt)
    bq = params["bq"].reshape(1, dim).astype(jnp.float32)
    bk = params["bk"].reshape(1, dim).astype(jnp.float32)
    bv = params["bv"].reshape(1, dim).astype(jnp.float32)
    bp = params["bp"].reshape(1, dim).astype(jnp.float32)

    grid = (B, Nq_pad // tq)

    # Resident operands: constant index_maps -> fetched from HBM exactly once.
    w_spec = pl.BlockSpec((dim, dim), lambda b, i: (0, 0))
    b_spec = pl.BlockSpec((1, dim), lambda b, i: (0, 0))
    # k/v blocks depend only on the batch index -> re-DMA'd only at batch change.
    kv_spec = pl.BlockSpec((1, Nk, dim), lambda b, i: (b, 0, 0))

    # Cost of the kernel as written: k/v projections once per batch, q/out
    # projections per q-tile, score + PV matmuls across heads; weights resident.
    flops = B * (4 * Nk * dim * dim            # k/v projections (once per batch)
                 + 4 * Nq_pad * dim * dim      # q projection + output projection
                 + 4 * Nq_pad * Nk * dim)      # scores + PV over all heads
    transcendentals = B * num_heads * Nq_pad * Nk
    bytes_accessed = (2 * B * Nq_pad * dim          # q (bf16)
                      + 2 * 2 * B * Nk * dim        # k, v (bf16)
                      + 2 * 4 * dim * dim           # 4 resident weights (bf16, once)
                      + 4 * 4 * dim                 # biases (f32)
                      + q.dtype.itemsize * B * Nq_pad * dim)   # output

    out = pl.pallas_call(
        functools.partial(_attention_kernel, scale=scale,
                          num_heads=num_heads, head_dim=hd),
        out_shape=jax.ShapeDtypeStruct((B, Nq_pad, dim), q.dtype),
        grid_spec=pltpu.PrefetchScalarGridSpec(
            num_scalar_prefetch=0,
            grid=grid,
            in_specs=[
                pl.BlockSpec((1, tq, dim), lambda b, i: (b, i, 0)),   # q tile
                kv_spec,                                              # k (full seq)
                kv_spec,                                              # v (full seq)
                w_spec, w_spec, w_spec, w_spec,                       # wq, wk, wv, wp
                b_spec, b_spec, b_spec, b_spec,                       # bq, bk, bv, bp
            ],
            out_specs=pl.BlockSpec((1, tq, dim), lambda b, i: (b, i, 0)),
            scratch_shapes=[
                pltpu.VMEM((Nk, dim), cdt),   # projected-K cache (per batch)
                pltpu.VMEM((Nk, dim), cdt),   # projected-V cache (per batch)
                pltpu.VMEM((tq, dim), cdt),   # merged per-head context
            ],
        ),
        compiler_params=pltpu.CompilerParams(
            # The q-tile axis must stay "arbitrary": the K/V projection caches are
            # filled at iq == 0 and reused by later q-tiles on the same core.
            dimension_semantics=("parallel", "arbitrary"),
            vmem_limit_bytes=64 * 1024 * 1024,
        ),
        cost_estimate=pl.CostEstimate(
            flops=int(flops),
            transcendentals=int(transcendentals),
            bytes_accessed=int(bytes_accessed),
        ),
    )(q_in, k_in, v_in, wq_t, wk_t, wv_t, wp_t, bq, bk, bv, bp)

    return out[:, :Nq, :] if Nq_pad != Nq else out


def init_params(key, dim, *, qkv_bias=True, debug_random=False):
    """Matches Attention.__init__ / _init_weights:
      - q/k/v/proj Linear weights ~ trunc_normal_(std=0.02), biases = 0,
      - then proj.weight and proj.bias are overridden to 0.
    The module as written dereferences self.proj.bias, so it only constructs with
    qkv_bias=True; biases are stored unconditionally (zeros when unused).
    debug_random=True randomizes everything (incl. proj and biases) so the
    self-test exercises the full kernel math (module init makes the output all 0).
    """
    ks = jax.random.split(key, 8)
    std = 0.02

    def trunc(k_, shape):
        # trunc_normal_(std=0.02, a=-2, b=2): the ±2 clamp is ~±100 sigma, i.e.
        # effectively untruncated N(0, std^2); a 2-sigma truncation is close enough.
        return std * jax.random.truncated_normal(k_, -2.0, 2.0, shape, jnp.float32)

    wq = trunc(ks[0], (dim, dim))
    wk = trunc(ks[1], (dim, dim))
    wv = trunc(ks[2], (dim, dim))
    if debug_random:
        wp = trunc(ks[3], (dim, dim))
        bq, bk, bv, bp = (trunc(ks[4], (dim,)), trunc(ks[5], (dim,)),
                          trunc(ks[6], (dim,)), trunc(ks[7], (dim,)))
    else:
        wp = jnp.zeros((dim, dim), jnp.float32)
        bq = bk = bv = bp = jnp.zeros((dim,), jnp.float32)
    if not qkv_bias:
        bq = bk = bv = jnp.zeros((dim,), jnp.float32)
    return {"wq": wq, "bq": bq, "wk": wk, "bk": bk, "wv": wv, "bv": bv,
            "wp": wp, "bp": bp}


def _reference(q, k, v, params, *, num_heads, qk_scale=None):
    """Pure-JAX f32 reference of Attention.forward (dropouts are identity)."""
    B, Nq, dim = q.shape
    Nk = k.shape[1]
    hd = dim // num_heads
    scale = qk_scale if qk_scale is not None else float(hd) ** -0.5
    qp = (q @ params["wq"].T + params["bq"]).reshape(B, Nq, num_heads, hd).transpose(0, 2, 1, 3)
    kp = (k @ params["wk"].T + params["bk"]).reshape(B, Nk, num_heads, hd).transpose(0, 2, 1, 3)
    vp = (v @ params["wv"].T + params["bv"]).reshape(B, Nk, num_heads, hd).transpose(0, 2, 1, 3)
    attn = jax.nn.softmax(jnp.einsum("bhqd,bhkd->bhqk", qp, kp) * scale, axis=-1)
    ctx = jnp.einsum("bhqk,bhkd->bhqd", attn, vp).transpose(0, 2, 1, 3).reshape(B, Nq, dim)
    return ctx @ params["wp"].T + params["bp"]


if __name__ == "__main__":
    key = jax.random.PRNGKey(0)
    kq, kk, kv, kparams = jax.random.split(key, 4)

    # Small cross-attention shapes: batch=2, N_q=8, N_k=16, dim=32, heads=8.
    B, Nq, Nk, dim, H = 2, 8, 16, 32, 8
    q = jax.random.normal(kq, (B, Nq, dim), jnp.float32)
    k = jax.random.normal(kk, (B, Nk, dim), jnp.float32)
    v = jax.random.normal(kv, (B, Nk, dim), jnp.float32)

    # debug_random=True: the module's own init zeroes proj (output would be all
    # zeros), so use random proj/biases to actually validate the kernel math.
    params = init_params(kparams, dim, qkv_bias=True, debug_random=True)

    fn = jax.jit(functools.partial(attention_forward, num_heads=H))
    out = fn(q, k, v, params)
    jax.block_until_ready(out)

    ref = _reference(q, k, v, params, num_heads=H)
    assert out.shape == (B, Nq, dim)
    # bf16 MXU operands -> slightly looser tolerance vs the f32 reference.
    assert jnp.allclose(out, ref, atol=2e-3, rtol=2e-2), \
        float(jnp.max(jnp.abs(out - ref)))

    print("KERNEL_OK")
</pallas_src>

<mosaic_0001>
module attributes {stable_mosaic.version = 11 : i64} {
  func.func @_attention_kernel(%arg0: i32, %arg1: i32, %arg2: memref<1x8x32xbf16, #tpu.memory_space<vmem>>, %arg3: memref<1x16x32xbf16, #tpu.memory_space<vmem>>, %arg4: memref<1x16x32xbf16, #tpu.memory_space<vmem>>, %arg5: memref<32x32xbf16, #tpu.memory_space<vmem>>, %arg6: memref<32x32xbf16, #tpu.memory_space<vmem>>, %arg7: memref<32x32xbf16, #tpu.memory_space<vmem>>, %arg8: memref<32x32xbf16, #tpu.memory_space<vmem>>, %arg9: memref<1x32xf32, #tpu.memory_space<vmem>>, %arg10: memref<1x32xf32, #tpu.memory_space<vmem>>, %arg11: memref<1x32xf32, #tpu.memory_space<vmem>>, %arg12: memref<1x32xf32, #tpu.memory_space<vmem>>, %arg13: memref<1x8x32xf32, #tpu.memory_space<vmem>>, %arg14: memref<16x32xbf16, #tpu.memory_space<vmem>>, %arg15: memref<16x32xbf16, #tpu.memory_space<vmem>>, %arg16: memref<8x32xbf16, #tpu.memory_space<vmem>>) attributes {dimension_semantics = [#tpu.dimension_semantics<parallel>, #tpu.dimension_semantics<arbitrary>], iteration_bounds = array<i64: 2, 1>, scalar_prefetch = 0 : i64, scratch_operands = 3 : i64, tpu.core_type = #tpu.core_type<tc>, window_params = [{transform_indices = @transform_0, window_bounds = array<i64: 1, 8, 32>}, {transform_indices = @transform_1, window_bounds = array<i64: 1, 16, 32>}, {transform_indices = @transform_2, window_bounds = array<i64: 1, 16, 32>}, {pipeline_mode = #tpu.pipeline_mode<synchronous>, transform_indices = @transform_3, window_bounds = array<i64: 32, 32>}, {pipeline_mode = #tpu.pipeline_mode<synchronous>, transform_indices = @transform_4, window_bounds = array<i64: 32, 32>}, {pipeline_mode = #tpu.pipeline_mode<synchronous>, transform_indices = @transform_5, window_bounds = array<i64: 32, 32>}, {pipeline_mode = #tpu.pipeline_mode<synchronous>, transform_indices = @transform_6, window_bounds = array<i64: 32, 32>}, {pipeline_mode = #tpu.pipeline_mode<synchronous>, transform_indices = @transform_7, window_bounds = array<i64: 1, 32>}, {pipeline_mode = #tpu.pipeline_mode<synchronous>, transform_indices = @transform_8, window_bounds = array<i64: 1, 32>}, {pipeline_mode = #tpu.pipeline_mode<synchronous>, transform_indices = @transform_9, window_bounds = array<i64: 1, 32>}, {pipeline_mode = #tpu.pipeline_mode<synchronous>, transform_indices = @transform_10, window_bounds = array<i64: 1, 32>}, {transform_indices = @transform_11, window_bounds = array<i64: 1, 8, 32>}]} {
    %c0_i32 = arith.constant 0 : i32
    %0 = arith.cmpi eq, %arg1, %c0_i32 : i32
    %1 = arith.extui %0 : i1 to i32
    %c0_i32_0 = arith.constant 0 : i32
    %2 = arith.cmpi ne, %1, %c0_i32_0 : i32
    scf.if %2 {
      %c0_91 = arith.constant 0 : index
      %c0_92 = arith.constant 0 : index
      %c0_93 = arith.constant 0 : index
      %166 = vector.load %arg3[%c0_91, %c0_92, %c0_93] : memref<1x16x32xbf16, #tpu.memory_space<vmem>>, vector<1x16x32xbf16>
      %167 = vector.shape_cast %166 : vector<1x16x32xbf16> to vector<16x32xbf16>
      %c0_94 = arith.constant 0 : index
      %c0_95 = arith.constant 0 : index
      %168 = vector.load %arg6[%c0_94, %c0_95] : memref<32x32xbf16, #tpu.memory_space<vmem>>, vector<32x32xbf16>
      %cst_96 = arith.constant dense<0.000000e+00> : vector<16x32xf32>
      %169 = tpu.matmul %167, %168, %cst_96 {dimension_numbers = #tpu.dot_dimension_numbers<[1], [0], [0], [1], [0, 0, 1, 1], [], []>} : vector<16x32xbf16>, vector<32x32xbf16>, vector<16x32xf32> -> vector<16x32xf32>
      %c0_97 = arith.constant 0 : index
      %c0_98 = arith.constant 0 : index
      %c0_99 = arith.constant 0 : index
      %170 = vector.load %arg4[%c0_97, %c0_98, %c0_99] : memref<1x16x32xbf16, #tpu.memory_space<vmem>>, vector<1x16x32xbf16>
      %171 = vector.shape_cast %170 : vector<1x16x32xbf16> to vector<16x32xbf16>
      %c0_100 = arith.constant 0 : index
      %c0_101 = arith.constant 0 : index
      %172 = vector.load %arg7[%c0_100, %c0_101] : memref<32x32xbf16, #tpu.memory_space<vmem>>, vector<32x32xbf16>
      %cst_102 = arith.constant dense<0.000000e+00> : vector<16x32xf32>
      %173 = tpu.matmul %171, %172, %cst_102 {dimension_numbers = #tpu.dot_dimension_numbers<[1], [0], [0], [1], [0, 0, 1, 1], [], []>} : vector<16x32xbf16>, vector<32x32xbf16>, vector<16x32xf32> -> vector<16x32xf32>
      %c0_103 = arith.constant 0 : index
      %c0_104 = arith.constant 0 : index
      %174 = vector.load %arg10[%c0_103, %c0_104] : memref<1x32xf32, #tpu.memory_space<vmem>>, vector<1x32xf32>
      %175 = vector.broadcast %174 : vector<1x32xf32> to vector<16x32xf32>
      %176 = arith.addf %169, %175 : vector<16x32xf32>
      %177 = arith.truncf %176 : vector<16x32xf32> to vector<16x32xbf16>
      %c0_105 = arith.constant 0 : index
      %c0_106 = arith.constant 0 : index
      %178 = vector.load %arg14[%c0_105, %c0_106] : memref<16x32xbf16, #tpu.memory_space<vmem>>, vector<16x32xbf16>
      tpu.vector_store %arg14[%c0_105, %c0_106], %177 {strides = array<i32>} : memref<16x32xbf16, #tpu.memory_space<vmem>>, vector<16x32xbf16>,
      %c0_107 = arith.constant 0 : index
      %c0_108 = arith.constant 0 : index
      %179 = vector.load %arg11[%c0_107, %c0_108] : memref<1x32xf32, #tpu.memory_space<vmem>>, vector<1x32xf32>
      %180 = vector.broadcast %179 : vector<1x32xf32> to vector<16x32xf32>
      %181 = arith.addf %173, %180 : vector<16x32xf32>
      %182 = arith.truncf %181 : vector<16x32xf32> to vector<16x32xbf16>
      %c0_109 = arith.constant 0 : index
      %c0_110 = arith.constant 0 : index
      %183 = vector.load %arg15[%c0_109, %c0_110] : memref<16x32xbf16, #tpu.memory_space<vmem>>, vector<16x32xbf16>
      tpu.vector_store %arg15[%c0_109, %c0_110], %182 {strides = array<i32>} : memref<16x32xbf16, #tpu.memory_space<vmem>>, vector<16x32xbf16>,
    } else {
    }
    %c0 = arith.constant 0 : index
    %c0_1 = arith.constant 0 : index
    %c0_2 = arith.constant 0 : index
    %3 = vector.load %arg2[%c0, %c0_1, %c0_2] : memref<1x8x32xbf16, #tpu.memory_space<vmem>>, vector<1x8x32xbf16>
    %4 = vector.shape_cast %3 : vector<1x8x32xbf16> to vector<8x32xbf16>
    %c0_3 = arith.constant 0 : index
    %c0_4 = arith.constant 0 : index
    %5 = vector.load %arg5[%c0_3, %c0_4] : memref<32x32xbf16, #tpu.memory_space<vmem>>, vector<32x32xbf16>
    %cst = arith.constant dense<0.000000e+00> : vector<8x32xf32>
    %6 = tpu.matmul %4, %5, %cst {dimension_numbers = #tpu.dot_dimension_numbers<[1], [0], [0], [1], [0, 0, 1, 1], [], []>} : vector<8x32xbf16>, vector<32x32xbf16>, vector<8x32xf32> -> vector<8x32xf32>
    %c0_5 = arith.constant 0 : index
    %c0_6 = arith.constant 0 : index
    %7 = vector.load %arg9[%c0_5, %c0_6] : memref<1x32xf32, #tpu.memory_space<vmem>>, vector<1x32xf32>
    %8 = vector.broadcast %7 : vector<1x32xf32> to vector<8x32xf32>
    %9 = arith.addf %6, %8 : vector<8x32xf32>
    %cst_7 = arith.constant 5.000000e-01 : f32
    %10 = vector.broadcast %cst_7 : f32 to vector<8x32xf32>
    %11 = arith.mulf %9, %10 : vector<8x32xf32>
    %12 = arith.truncf %11 : vector<8x32xf32> to vector<8x32xbf16>
    %13 = vector.extract_strided_slice %12 {offsets = [0, 0], sizes = [8, 4], strides = [1, 1]} : vector<8x32xbf16> to vector<8x4xbf16>
    %c0_8 = arith.constant 0 : index
    %c0_9 = arith.constant 0 : index
    %14 = vector.load %arg14[%c0_8, %c0_9] : memref<16x32xbf16, #tpu.memory_space<vmem>>, vector<16x4xbf16>
    %c0_10 = arith.constant 0 : index
    %c0_11 = arith.constant 0 : index
    %15 = vector.load %arg15[%c0_10, %c0_11] : memref<16x32xbf16, #tpu.memory_space<vmem>>, vector<16x4xbf16>
    %cst_12 = arith.constant dense<0.000000e+00> : vector<8x16xf32>
    %16 = tpu.matmul %13, %14, %cst_12 {dimension_numbers = #tpu.dot_dimension_numbers<[1], [1], [0], [0], [0, 0, 1, 0], [], []>} : vector<8x4xbf16>, vector<16x4xbf16>, vector<8x16xf32> -> vector<8x16xf32>
    %cst_13 = arith.constant dense<0xFF800000> : vector<8xf32>
    %17 = vector.multi_reduction <maximumf>, %16, %cst_13 [1] : vector<8x16xf32> to vector<8xf32>
    %18 = vector.shape_cast %17 : vector<8xf32> to vector<8x1xf32>
    %19 = vector.broadcast %18 : vector<8x1xf32> to vector<8x16xf32>
    %20 = arith.subf %16, %19 : vector<8x16xf32>
    %21 = math.exp %20 : vector<8x16xf32>
    %cst_14 = arith.constant dense<0.000000e+00> : vector<8xf32>
    %22 = vector.multi_reduction <add>, %21, %cst_14 [1] : vector<8x16xf32> to vector<8xf32>
    %23 = vector.shape_cast %22 : vector<8xf32> to vector<8x1xf32>
    %24 = arith.truncf %21 : vector<8x16xf32> to vector<8x16xbf16>
    %cst_15 = arith.constant dense<0.000000e+00> : vector<8x4xf32>
    %25 = tpu.matmul %24, %15, %cst_15 {dimension_numbers = #tpu.dot_dimension_numbers<[1], [0], [0], [1], [0, 0, 1, 1], [], []>} : vector<8x16xbf16>, vector<16x4xbf16>, vector<8x4xf32> -> vector<8x4xf32>
    %26 = tpu.reciprocal %23 {approx = true} : vector<8x1xf32> -> vector<8x1xf32>
    %27 = vector.broadcast %26 : vector<8x1xf32> to vector<8x4xf32>
    %28 = arith.mulf %25, %27 : vector<8x4xf32>
    %29 = arith.truncf %28 : vector<8x4xf32> to vector<8x4xbf16>
    %c0_16 = arith.constant 0 : index
    %c0_17 = arith.constant 0 : index
    %30 = vector.load %arg16[%c0_16, %c0_17] : memref<8x32xbf16, #tpu.memory_space<vmem>>, vector<8x4xbf16>
    tpu.vector_store %arg16[%c0_16, %c0_17], %29 {strides = array<i32>} : memref<8x32xbf16, #tpu.memory_space<vmem>>, vector<8x4xbf16>,
    %31 = vector.extract_strided_slice %12 {offsets = [0, 4], sizes = [8, 4], strides = [1, 1]} : vector<8x32xbf16> to vector<8x4xbf16>
    %c0_18 = arith.constant 0 : index
    %c4 = arith.constant 4 : index
    %32 = vector.load %arg14[%c0_18, %c4] : memref<16x32xbf16, #tpu.memory_space<vmem>>, vector<16x4xbf16>
    %c0_19 = arith.constant 0 : index
    %c4_20 = arith.constant 4 : index
    %33 = vector.load %arg15[%c0_19, %c4_20] : memref<16x32xbf16, #tpu.memory_space<vmem>>, vector<16x4xbf16>
    %cst_21 = arith.constant dense<0.000000e+00> : vector<8x16xf32>
    %34 = tpu.matmul %31, %32, %cst_21 {dimension_numbers = #tpu.dot_dimension_numbers<[1], [1], [0], [0], [0, 0, 1, 0], [], []>} : vector<8x4xbf16>, vector<16x4xbf16>, vector<8x16xf32> -> vector<8x16xf32>
    %cst_22 = arith.constant dense<0xFF800000> : vector<8xf32>
    %35 = vector.multi_reduction <maximumf>, %34, %cst_22 [1] : vector<8x16xf32> to vector<8xf32>
    %36 = vector.shape_cast %35 : vector<8xf32> to vector<8x1xf32>
    %37 = vector.broadcast %36 : vector<8x1xf32> to vector<8x16xf32>
    %38 = arith.subf %34, %37 : vector<8x16xf32>
    %39 = math.exp %38 : vector<8x16xf32>
    %cst_23 = arith.constant dense<0.000000e+00> : vector<8xf32>
    %40 = vector.multi_reduction <add>, %39, %cst_23 [1] : vector<8x16xf32> to vector<8xf32>
    %41 = vector.shape_cast %40 : vector<8xf32> to vector<8x1xf32>
    %42 = arith.truncf %39 : vector<8x16xf32> to vector<8x16xbf16>
    %cst_24 = arith.constant dense<0.000000e+00> : vector<8x4xf32>
    %43 = tpu.matmul %42, %33, %cst_24 {dimension_numbers = #tpu.dot_dimension_numbers<[1], [0], [0], [1], [0, 0, 1, 1], [], []>} : vector<8x16xbf16>, vector<16x4xbf16>, vector<8x4xf32> -> vector<8x4xf32>
    %44 = tpu.reciprocal %41 {approx = true} : vector<8x1xf32> -> vector<8x1xf32>
    %45 = vector.broadcast %44 : vector<8x1xf32> to vector<8x4xf32>
    %46 = arith.mulf %43, %45 : vector<8x4xf32>
    %47 = arith.truncf %46 : vector<8x4xf32> to vector<8x4xbf16>
    %c0_25 = arith.constant 0 : index
    %c4_26 = arith.constant 4 : index
    %48 = vector.load %arg16[%c0_25, %c4_26] : memref<8x32xbf16, #tpu.memory_space<vmem>>, vector<8x4xbf16>
    tpu.vector_store %arg16[%c0_25, %c4_26], %47 {strides = array<i32>} : memref<8x32xbf16, #tpu.memory_space<vmem>>, vector<8x4xbf16>,
    %49 = vector.extract_strided_slice %12 {offsets = [0, 8], sizes = [8, 4], strides = [1, 1]} : vector<8x32xbf16> to vector<8x4xbf16>
    %c0_27 = arith.constant 0 : index
    %c8 = arith.constant 8 : index
    %50 = vector.load %arg14[%c0_27, %c8] : memref<16x32xbf16, #tpu.memory_space<vmem>>, vector<16x4xbf16>
    %c0_28 = arith.constant 0 : index
    %c8_29 = arith.constant 8 : index
    %51 = vector.load %arg15[%c0_28, %c8_29] : memref<16x32xbf16, #tpu.memory_space<vmem>>, vector<16x4xbf16>
    %cst_30 = arith.constant dense<0.000000e+00> : vector<8x16xf32>
    %52 = tpu.matmul %49, %50, %cst_30 {dimension_numbers = #tpu.dot_dimension_numbers<[1], [1], [0], [0], [0, 0, 1, 0], [], []>} : vector<8x4xbf16>, vector<16x4xbf16>, vector<8x16xf32> -> vector<8x16xf32>
    %cst_31 = arith.constant dense<0xFF800000> : vector<8xf32>
    %53 = vector.multi_reduction <maximumf>, %52, %cst_31 [1] : vector<8x16xf32> to vector<8xf32>
    %54 = vector.shape_cast %53 : vector<8xf32> to vector<8x1xf32>
    %55 = vector.broadcast %54 : vector<8x1xf32> to vector<8x16xf32>
    %56 = arith.subf %52, %55 : vector<8x16xf32>
    %57 = math.exp %56 : vector<8x16xf32>
    %cst_32 = arith.constant dense<0.000000e+00> : vector<8xf32>
    %58 = vector.multi_reduction <add>, %57, %cst_32 [1] : vector<8x16xf32> to vector<8xf32>
    %59 = vector.shape_cast %58 : vector<8xf32> to vector<8x1xf32>
    %60 = arith.truncf %57 : vector<8x16xf32> to vector<8x16xbf16>
    %cst_33 = arith.constant dense<0.000000e+00> : vector<8x4xf32>
    %61 = tpu.matmul %60, %51, %cst_33 {dimension_numbers = #tpu.dot_dimension_numbers<[1], [0], [0], [1], [0, 0, 1, 1], [], []>} : vector<8x16xbf16>, vector<16x4xbf16>, vector<8x4xf32> -> vector<8x4xf32>
    %62 = tpu.reciprocal %59 {approx = true} : vector<8x1xf32> -> vector<8x1xf32>
    %63 = vector.broadcast %62 : vector<8x1xf32> to vector<8x4xf32>
    %64 = arith.mulf %61, %63 : vector<8x4xf32>
    %65 = arith.truncf %64 : vector<8x4xf32> to vector<8x4xbf16>
    %c0_34 = arith.constant 0 : index
    %c8_35 = arith.constant 8 : index
    %66 = vector.load %arg16[%c0_34, %c8_35] : memref<8x32xbf16, #tpu.memory_space<vmem>>, vector<8x4xbf16>
    tpu.vector_store %arg16[%c0_34, %c8_35], %65 {strides = array<i32>} : memref<8x32xbf16, #tpu.memory_space<vmem>>, vector<8x4xbf16>,
    %67 = vector.extract_strided_slice %12 {offsets = [0, 12], sizes = [8, 4], strides = [1, 1]} : vector<8x32xbf16> to vector<8x4xbf16>
    %c0_36 = arith.constant 0 : index
    %c12 = arith.constant 12 : index
    %68 = vector.load %arg14[%c0_36, %c12] : memref<16x32xbf16, #tpu.memory_space<vmem>>, vector<16x4xbf16>
    %c0_37 = arith.constant 0 : index
    %c12_38 = arith.constant 12 : index
    %69 = vector.load %arg15[%c0_37, %c12_38] : memref<16x32xbf16, #tpu.memory_space<vmem>>, vector<16x4xbf16>
    %cst_39 = arith.constant dense<0.000000e+00> : vector<8x16xf32>
    %70 = tpu.matmul %67, %68, %cst_39 {dimension_numbers = #tpu.dot_dimension_numbers<[1], [1], [0], [0], [0, 0, 1, 0], [], []>} : vector<8x4xbf16>, vector<16x4xbf16>, vector<8x16xf32> -> vector<8x16xf32>
    %cst_40 = arith.constant dense<0xFF800000> : vector<8xf32>
    %71 = vector.multi_reduction <maximumf>, %70, %cst_40 [1] : vector<8x16xf32> to vector<8xf32>
    %72 = vector.shape_cast %71 : vector<8xf32> to vector<8x1xf32>
    %73 = vector.broadcast %72 : vector<8x1xf32> to vector<8x16xf32>
    %74 = arith.subf %70, %73 : vector<8x16xf32>
    %75 = math.exp %74 : vector<8x16xf32>
    %cst_41 = arith.constant dense<0.000000e+00> : vector<8xf32>
    %76 = vector.multi_reduction <add>, %75, %cst_41 [1] : vector<8x16xf32> to vector<8xf32>
    %77 = vector.shape_cast %76 : vector<8xf32> to vector<8x1xf32>
    %78 = arith.truncf %75 : vector<8x16xf32> to vector<8x16xbf16>
    %cst_42 = arith.constant dense<0.000000e+00> : vector<8x4xf32>
    %79 = tpu.matmul %78, %69, %cst_42 {dimension_numbers = #tpu.dot_dimension_numbers<[1], [0], [0], [1], [0, 0, 1, 1], [], []>} : vector<8x16xbf16>, vector<16x4xbf16>, vector<8x4xf32> -> vector<8x4xf32>
    %80 = tpu.reciprocal %77 {approx = true} : vector<8x1xf32> -> vector<8x1xf32>
    %81 = vector.broadcast %80 : vector<8x1xf32> to vector<8x4xf32>
    %82 = arith.mulf %79, %81 : vector<8x4xf32>
    %83 = arith.truncf %82 : vector<8x4xf32> to vector<8x4xbf16>
    %c0_43 = arith.constant 0 : index
    %c12_44 = arith.constant 12 : index
    %84 = vector.load %arg16[%c0_43, %c12_44] : memref<8x32xbf16, #tpu.memory_space<vmem>>, vector<8x4xbf16>
    tpu.vector_store %arg16[%c0_43, %c12_44], %83 {strides = array<i32>} : memref<8x32xbf16, #tpu.memory_space<vmem>>, vector<8x4xbf16>,
    %85 = vector.extract_strided_slice %12 {offsets = [0, 16], sizes = [8, 4], strides = [1, 1]} : vector<8x32xbf16> to vector<8x4xbf16>
    %c0_45 = arith.constant 0 : index
    %c16 = arith.constant 16 : index
    %86 = vector.load %arg14[%c0_45, %c16] : memref<16x32xbf16, #tpu.memory_space<vmem>>, vector<16x4xbf16>
    %c0_46 = arith.constant 0 : index
    %c16_47 = arith.constant 16 : index
    %87 = vector.load %arg15[%c0_46, %c16_47] : memref<16x32xbf16, #tpu.memory_space<vmem>>, vector<16x4xbf16>
    %cst_48 = arith.constant dense<0.000000e+00> : vector<8x16xf32>
    %88 = tpu.matmul %85, %86, %cst_48 {dimension_numbers = #tpu.dot_dimension_numbers<[1], [1], [0], [0], [0, 0, 1, 0], [], []>} : vector<8x4xbf16>, vector<16x4xbf16>, vector<8x16xf32> -> vector<8x16xf32>
    %cst_49 = arith.constant dense<0xFF800000> : vector<8xf32>
    %89 = vector.multi_reduction <maximumf>, %88, %cst_49 [1] : vector<8x16xf32> to vector<8xf32>
    %90 = vector.shape_cast %89 : vector<8xf32> to vector<8x1xf32>
    %91 = vector.broadcast %90 : vector<8x1xf32> to vector<8x16xf32>
    %92 = arith.subf %88, %91 : vector<8x16xf32>
    %93 = math.exp %92 : vector<8x16xf32>
    %cst_50 = arith.constant dense<0.000000e+00> : vector<8xf32>
    %94 = vector.multi_reduction <add>, %93, %cst_50 [1] : vector<8x16xf32> to vector<8xf32>
    %95 = vector.shape_cast %94 : vector<8xf32> to vector<8x1xf32>
    %96 = arith.truncf %93 : vector<8x16xf32> to vector<8x16xbf16>
    %cst_51 = arith.constant dense<0.000000e+00> : vector<8x4xf32>
    %97 = tpu.matmul %96, %87, %cst_51 {dimension_numbers = #tpu.dot_dimension_numbers<[1], [0], [0], [1], [0, 0, 1, 1], [], []>} : vector<8x16xbf16>, vector<16x4xbf16>, vector<8x4xf32> -> vector<8x4xf32>
    %98 = tpu.reciprocal %95 {approx = true} : vector<8x1xf32> -> vector<8x1xf32>
    %99 = vector.broadcast %98 : vector<8x1xf32> to vector<8x4xf32>
    %100 = arith.mulf %97, %99 : vector<8x4xf32>
    %101 = arith.truncf %100 : vector<8x4xf32> to vector<8x4xbf16>
    %c0_52 = arith.constant 0 : index
    %c16_53 = arith.constant 16 : index
    %102 = vector.load %arg16[%c0_52, %c16_53] : memref<8x32xbf16, #tpu.memory_space<vmem>>, vector<8x4xbf16>
    tpu.vector_store %arg16[%c0_52, %c16_53], %101 {strides = array<i32>} : memref<8x32xbf16, #tpu.memory_space<vmem>>, vector<8x4xbf16>,
    %103 = vector.extract_strided_slice %12 {offsets = [0, 20], sizes = [8, 4], strides = [1, 1]} : vector<8x32xbf16> to vector<8x4xbf16>
    %c0_54 = arith.constant 0 : index
    %c20 = arith.constant 20 : index
    %104 = vector.load %arg14[%c0_54, %c20] : memref<16x32xbf16, #tpu.memory_space<vmem>>, vector<16x4xbf16>
    %c0_55 = arith.constant 0 : index
    %c20_56 = arith.constant 20 : index
    %105 = vector.load %arg15[%c0_55, %c20_56] : memref<16x32xbf16, #tpu.memory_space<vmem>>, vector<16x4xbf16>
    %cst_57 = arith.constant dense<0.000000e+00> : vector<8x16xf32>
    %106 = tpu.matmul %103, %104, %cst_57 {dimension_numbers = #tpu.dot_dimension_numbers<[1], [1], [0], [0], [0, 0, 1, 0], [], []>} : vector<8x4xbf16>, vector<16x4xbf16>, vector<8x16xf32> -> vector<8x16xf32>
    %cst_58 = arith.constant dense<0xFF800000> : vector<8xf32>
    %107 = vector.multi_reduction <maximumf>, %106, %cst_58 [1] : vector<8x16xf32> to vector<8xf32>
    %108 = vector.shape_cast %107 : vector<8xf32> to vector<8x1xf32>
    %109 = vector.broadcast %108 : vector<8x1xf32> to vector<8x16xf32>
    %110 = arith.subf %106, %109 : vector<8x16xf32>
    %111 = math.exp %110 : vector<8x16xf32>
    %cst_59 = arith.constant dense<0.000000e+00> : vector<8xf32>
    %112 = vector.multi_reduction <add>, %111, %cst_59 [1] : vector<8x16xf32> to vector<8xf32>
    %113 = vector.shape_cast %112 : vector<8xf32> to vector<8x1xf32>
    %114 = arith.truncf %111 : vector<8x16xf32> to vector<8x16xbf16>
    %cst_60 = arith.constant dense<0.000000e+00> : vector<8x4xf32>
    %115 = tpu.matmul %114, %105, %cst_60 {dimension_numbers = #tpu.dot_dimension_numbers<[1], [0], [0], [1], [0, 0, 1, 1], [], []>} : vector<8x16xbf16>, vector<16x4xbf16>, vector<8x4xf32> -> vector<8x4xf32>
    %116 = tpu.reciprocal %113 {approx = true} : vector<8x1xf32> -> vector<8x1xf32>
    %117 = vector.broadcast %116 : vector<8x1xf32> to vector<8x4xf32>
    %118 = arith.mulf %115, %117 : vector<8x4xf32>
    %119 = arith.truncf %118 : vector<8x4xf32> to vector<8x4xbf16>
    %c0_61 = arith.constant 0 : index
    %c20_62 = arith.constant 20 : index
    %120 = vector.load %arg16[%c0_61, %c20_62] : memref<8x32xbf16, #tpu.memory_space<vmem>>, vector<8x4xbf16>
    tpu.vector_store %arg16[%c0_61, %c20_62], %119 {strides = array<i32>} : memref<8x32xbf16, #tpu.memory_space<vmem>>, vector<8x4xbf16>,
    %121 = vector.extract_strided_slice %12 {offsets = [0, 24], sizes = [8, 4], strides = [1, 1]} : vector<8x32xbf16> to vector<8x4xbf16>
    %c0_63 = arith.constant 0 : index
    %c24 = arith.constant 24 : index
    %122 = vector.load %arg14[%c0_63, %c24] : memref<16x32xbf16, #tpu.memory_space<vmem>>, vector<16x4xbf16>
    %c0_64 = arith.constant 0 : index
    %c24_65 = arith.constant 24 : index
    %123 = vector.load %arg15[%c0_64, %c24_65] : memref<16x32xbf16, #tpu.memory_space<vmem>>, vector<16x4xbf16>
    %cst_66 = arith.constant dense<0.000000e+00> : vector<8x16xf32>
    %124 = tpu.matmul %121, %122, %cst_66 {dimension_numbers = #tpu.dot_dimension_numbers<[1], [1], [0], [0], [0, 0, 1, 0], [], []>} : vector<8x4xbf16>, vector<16x4xbf16>, vector<8x16xf32> -> vector<8x16xf32>
    %cst_67 = arith.constant dense<0xFF800000> : vector<8xf32>
    %125 = vector.multi_reduction <maximumf>, %124, %cst_67 [1] : vector<8x16xf32> to vector<8xf32>
    %126 = vector.shape_cast %125 : vector<8xf32> to vector<8x1xf32>
    %127 = vector.broadcast %126 : vector<8x1xf32> to vector<8x16xf32>
    %128 = arith.subf %124, %127 : vector<8x16xf32>
    %129 = math.exp %128 : vector<8x16xf32>
    %cst_68 = arith.constant dense<0.000000e+00> : vector<8xf32>
    %130 = vector.multi_reduction <add>, %129, %cst_68 [1] : vector<8x16xf32> to vector<8xf32>
    %131 = vector.shape_cast %130 : vector<8xf32> to vector<8x1xf32>
    %132 = arith.truncf %129 : vector<8x16xf32> to vector<8x16xbf16>
    %cst_69 = arith.constant dense<0.000000e+00> : vector<8x4xf32>
    %133 = tpu.matmul %132, %123, %cst_69 {dimension_numbers = #tpu.dot_dimension_numbers<[1], [0], [0], [1], [0, 0, 1, 1], [], []>} : vector<8x16xbf16>, vector<16x4xbf16>, vector<8x4xf32> -> vector<8x4xf32>
    %134 = tpu.reciprocal %131 {approx = true} : vector<8x1xf32> -> vector<8x1xf32>
    %135 = vector.broadcast %134 : vector<8x1xf32> to vector<8x4xf32>
    %136 = arith.mulf %133, %135 : vector<8x4xf32>
    %137 = arith.truncf %136 : vector<8x4xf32> to vector<8x4xbf16>
    %c0_70 = arith.constant 0 : index
    %c24_71 = arith.constant 24 : index
    %138 = vector.load %arg16[%c0_70, %c24_71] : memref<8x32xbf16, #tpu.memory_space<vmem>>, vector<8x4xbf16>
    tpu.vector_store %arg16[%c0_70, %c24_71], %137 {strides = array<i32>} : memref<8x32xbf16, #tpu.memory_space<vmem>>, vector<8x4xbf16>,
    %139 = vector.extract_strided_slice %12 {offsets = [0, 28], sizes = [8, 4], strides = [1, 1]} : vector<8x32xbf16> to vector<8x4xbf16>
    %c0_72 = arith.constant 0 : index
    %c28 = arith.constant 28 : index
    %140 = vector.load %arg14[%c0_72, %c28] : memref<16x32xbf16, #tpu.memory_space<vmem>>, vector<16x4xbf16>
    %c0_73 = arith.constant 0 : index
    %c28_74 = arith.constant 28 : index
    %141 = vector.load %arg15[%c0_73, %c28_74] : memref<16x32xbf16, #tpu.memory_space<vmem>>, vector<16x4xbf16>
    %cst_75 = arith.constant dense<0.000000e+00> : vector<8x16xf32>
    %142 = tpu.matmul %139, %140, %cst_75 {dimension_numbers = #tpu.dot_dimension_numbers<[1], [1], [0], [0], [0, 0, 1, 0], [], []>} : vector<8x4xbf16>, vector<16x4xbf16>, vector<8x16xf32> -> vector<8x16xf32>
    %cst_76 = arith.constant dense<0xFF800000> : vector<8xf32>
    %143 = vector.multi_reduction <maximumf>, %142, %cst_76 [1] : vector<8x16xf32> to vector<8xf32>
    %144 = vector.shape_cast %143 : vector<8xf32> to vector<8x1xf32>
    %145 = vector.broadcast %144 : vector<8x1xf32> to vector<8x16xf32>
    %146 = arith.subf %142, %145 : vector<8x16xf32>
    %147 = math.exp %146 : vector<8x16xf32>
    %cst_77 = arith.constant dense<0.000000e+00> : vector<8xf32>
    %148 = vector.multi_reduction <add>, %147, %cst_77 [1] : vector<8x16xf32> to vector<8xf32>
    %149 = vector.shape_cast %148 : vector<8xf32> to vector<8x1xf32>
    %150 = arith.truncf %147 : vector<8x16xf32> to vector<8x16xbf16>
    %cst_78 = arith.constant dense<0.000000e+00> : vector<8x4xf32>
    %151 = tpu.matmul %150, %141, %cst_78 {dimension_numbers = #tpu.dot_dimension_numbers<[1], [0], [0], [1], [0, 0, 1, 1], [], []>} : vector<8x16xbf16>, vector<16x4xbf16>, vector<8x4xf32> -> vector<8x4xf32>
    %152 = tpu.reciprocal %149 {approx = true} : vector<8x1xf32> -> vector<8x1xf32>
    %153 = vector.broadcast %152 : vector<8x1xf32> to vector<8x4xf32>
    %154 = arith.mulf %151, %153 : vector<8x4xf32>
    %155 = arith.truncf %154 : vector<8x4xf32> to vector<8x4xbf16>
    %c0_79 = arith.constant 0 : index
    %c28_80 = arith.constant 28 : index
    %156 = vector.load %arg16[%c0_79, %c28_80] : memref<8x32xbf16, #tpu.memory_space<vmem>>, vector<8x4xbf16>
    tpu.vector_store %arg16[%c0_79, %c28_80], %155 {strides = array<i32>} : memref<8x32xbf16, #tpu.memory_space<vmem>>, vector<8x4xbf16>,
    %c0_81 = arith.constant 0 : index
    %c0_82 = arith.constant 0 : index
    %157 = vector.load %arg16[%c0_81, %c0_82] : memref<8x32xbf16, #tpu.memory_space<vmem>>, vector<8x32xbf16>
    %c0_83 = arith.constant 0 : index
    %c0_84 = arith.constant 0 : index
    %158 = vector.load %arg8[%c0_83, %c0_84] : memref<32x32xbf16, #tpu.memory_space<vmem>>, vector<32x32xbf16>
    %cst_85 = arith.constant dense<0.000000e+00> : vector<8x32xf32>
    %159 = tpu.matmul %157, %158, %cst_85 {dimension_numbers = #tpu.dot_dimension_numbers<[1], [0], [0], [1], [0, 0, 1, 1], [], []>} : vector<8x32xbf16>, vector<32x32xbf16>, vector<8x32xf32> -> vector<8x32xf32>
    %c0_86 = arith.constant 0 : index
    %c0_87 = arith.constant 0 : index
    %160 = vector.load %arg12[%c0_86, %c0_87] : memref<1x32xf32, #tpu.memory_space<vmem>>, vector<1x32xf32>
    %161 = vector.broadcast %160 : vector<1x32xf32> to vector<8x32xf32>
    %162 = arith.addf %159, %161 : vector<8x32xf32>
    %c0_88 = arith.constant 0 : index
    %c0_89 = arith.constant 0 : index
    %c0_90 = arith.constant 0 : index
    %163 = vector.load %arg13[%c0_88, %c0_89, %c0_90] : memref<1x8x32xf32, #tpu.memory_space<vmem>>, vector<1x8x32xf32>
    %164 = vector.shape_cast %163 : vector<1x8x32xf32> to vector<8x32xf32>
    %165 = vector.shape_cast %162 : vector<8x32xf32> to vector<1x8x32xf32>
    tpu.vector_store %arg13[%c0_88, %c0_89, %c0_90], %165 {strides = array<i32>} : memref<1x8x32xf32, #tpu.memory_space<vmem>>, vector<1x8x32xf32>,
    return
  }
  func.func @transform_0(%arg0: i32, %arg1: i32) -> (i32, i32, i32) {
    %c0_i32 = arith.constant 0 : i32
    %c0_i32_0 = arith.constant 0 : i32
    return %arg0, %arg1, %c0_i32 : i32, i32, i32
  }
  func.func @transform_1(%arg0: i32, %arg1: i32) -> (i32, i32, i32) {
    %c0_i32 = arith.constant 0 : i32
    %c0_i32_0 = arith.constant 0 : i32
    %c0_i32_1 = arith.constant 0 : i32
    return %arg0, %c0_i32, %c0_i32_0 : i32, i32, i32
  }
  func.func @transform_2(%arg0: i32, %arg1: i32) -> (i32, i32, i32) {
    %c0_i32 = arith.constant 0 : i32
    %c0_i32_0 = arith.constant 0 : i32
    %c0_i32_1 = arith.constant 0 : i32
    return %arg0, %c0_i32, %c0_i32_0 : i32, i32, i32
  }
  func.func @transform_3(%arg0: i32, %arg1: i32) -> (i32, i32) {
    %c0_i32 = arith.constant 0 : i32
    %c0_i32_0 = arith.constant 0 : i32
    %c0_i32_1 = arith.constant 0 : i32
    return %c0_i32, %c0_i32_0 : i32, i32
  }
  func.func @transform_4(%arg0: i32, %arg1: i32) -> (i32, i32) {
    %c0_i32 = arith.constant 0 : i32
    %c0_i32_0 = arith.constant 0 : i32
    %c0_i32_1 = arith.constant 0 : i32
    return %c0_i32, %c0_i32_0 : i32, i32
  }
  func.func @transform_5(%arg0: i32, %arg1: i32) -> (i32, i32) {
    %c0_i32 = arith.constant 0 : i32
    %c0_i32_0 = arith.constant 0 : i32
    %c0_i32_1 = arith.constant 0 : i32
    return %c0_i32, %c0_i32_0 : i32, i32
  }
  func.func @transform_6(%arg0: i32, %arg1: i32) -> (i32, i32) {
    %c0_i32 = arith.constant 0 : i32
    %c0_i32_0 = arith.constant 0 : i32
    %c0_i32_1 = arith.constant 0 : i32
    return %c0_i32, %c0_i32_0 : i32, i32
  }
  func.func @transform_7(%arg0: i32, %arg1: i32) -> (i32, i32) {
    %c0_i32 = arith.constant 0 : i32
    %c0_i32_0 = arith.constant 0 : i32
    %c0_i32_1 = arith.constant 0 : i32
    return %c0_i32, %c0_i32_0 : i32, i32
  }
  func.func @transform_8(%arg0: i32, %arg1: i32) -> (i32, i32) {
    %c0_i32 = arith.constant 0 : i32
    %c0_i32_0 = arith.constant 0 : i32
    %c0_i32_1 = arith.constant 0 : i32
    return %c0_i32, %c0_i32_0 : i32, i32
  }
  func.func @transform_9(%arg0: i32, %arg1: i32) -> (i32, i32) {
    %c0_i32 = arith.constant 0 : i32
    %c0_i32_0 = arith.constant 0 : i32
    %c0_i32_1 = arith.constant 0 : i32
    return %c0_i32, %c0_i32_0 : i32, i32
  }
  func.func @transform_10(%arg0: i32, %arg1: i32) -> (i32, i32) {
    %c0_i32 = arith.constant 0 : i32
    %c0_i32_0 = arith.constant 0 : i32
    %c0_i32_1 = arith.constant 0 : i32
    return %c0_i32, %c0_i32_0 : i32, i32
  }
  func.func @transform_11(%arg0: i32, %arg1: i32) -> (i32, i32, i32) {
    %c0_i32 = arith.constant 0 : i32
    %c0_i32_0 = arith.constant 0 : i32
    return %arg0, %arg1, %c0_i32 : i32, i32, i32
  }
}

</mosaic_0001>

<bundles_post_ra>
// kernel: attention_forward.1
= control target key start
LH: loop header
LB: loop body
LE: loop exit
PB: predicated region body
PF: predicated region fallthrough
CT: control target
= control target key end

     0   :  { %s2774_s0 = inlined_call_operand.vmem [shape: bf16[2,8,32], index: 0, kind: input, shape index: {}]   ;;  %s2775_s1 = inlined_call_operand.vmem [shape: bf16[2,16,32], index: 1, kind: input, shape index: {}]   ;;  %s2776_s2 = inlined_call_operand.vmem [shape: bf16[2,16,32], index: 2, kind: input, shape index: {}]   ;;  %s2777_s3 = inlined_call_operand.vmem [shape: bf16[32,32], index: 3, kind: input, shape index: {}]   ;;  %s2778_s4 = inlined_call_operand.vmem [shape: bf16[32,32], index: 4, kind: input, shape index: {}]   ;;  %s2779_s5 = inlined_call_operand.vmem [shape: bf16[32,32], index: 5, kind: input, shape index: {}]   ;;  %s2780_s6 = inlined_call_operand.vmem [shape: bf16[32,32], index: 6, kind: input, shape index: {}]   ;;  %s2781_s7 = inlined_call_operand.vmem [shape: f32[1,32], index: 7, kind: input, shape index: {}]   ;;  %s2782_s8 = inlined_call_operand.vmem [shape: f32[1,32], index: 8, kind: input, shape index: {}]   ;;  %s2783_s9 = inlined_call_operand.vmem [shape: f32[1,32], index: 9, kind: input, shape index: {}]   ;;  %s2784_s10 = inlined_call_operand.vmem [shape: f32[1,32], index: 10, kind: input, shape index: {}]   ;;  %s2785_s11 = inlined_call_operand.hbm [shape: f32[2,8,32], index: 11, kind: output, shape index: {}]  }
   0x1   :  { %2788 = sst [smem:[#allocation10_spill]] %s2778_s4 }
   0x2   :  { %16 = vsyncpa [#allocation6], 0 }
   0x3   :  { %18 = vsyncpa [#allocation6 + $0x1], 0  ;;  %s2454_s17 = smov 0   ;;  %s2456_s18 = smov 0  }
   0x4   :  { %s2458_s19 = smov 0   ;;  %s2460_s20 = smov 0  }
   0x5   :  { %s2462_s21 = smov 0   ;;  %s2464_s22 = smov 0  }
   0x6 LB: > { %2789 = sst [smem:[#allocation8_spill]] %s2371_s21  ;;  %s1909_s23 = sadd.s32 4294967295, %s2375_s22   ;;  %s2375_s22 = sphi %s2464_s22, %s24_s22   ;;  %s2371_s21 = sphi %s2462_s21, %s2795_s21   ;;  %s2367_s20 = sphi %s2460_s20, %s2794_s20   ;;  %s2363_s19 = sphi %s2458_s19, %s2798_s19   ;;  %s2359_s18 = sphi %s2456_s18, %s2797_s18   ;;  %s2355_s17 = sphi %s2454_s17, %s2796_s17  }
   0x7   : > { %s1910_s24 = sadd.s32 4294967294, %s2375_s22   ;;  %s36_s25 = sadd.s32 1, %s2371_s21 }
   0x8   : > { %s293_s26 = sadd.s32 1, %s2363_s19  ;;  %p38_p0 = scmp.ge.s32.totalorder %s36_s25, 2 }
   0x9   : > { %p303_p1 = scmp.ne.s32.totalorder %s2363_s19, %s2359_s18  ;;  %p304_p2 = scmp.eq.s32.totalorder %s1909_s23, 1 }
   0xa   : > { %p309_p3 = scmp.ne.s32.totalorder %s2359_s18, %s2355_s17  ;;  %s2800_s25 = smov (%p38_p0, %s36_s25), 0 }
   0xb   : > { %2790 = sst [smem:[#allocation9_spill]] %s2800_s25  ;;  %p2494_p4 = por %p304_p2, %p303_p1 }
   0xc   : > { %p310_p5 = scmp.eq.s32.totalorder %s1910_s24, 1  ;;  %s288_s28 = ssub.s32 %s2371_s21, %s2800_s25 }
   0xd   : > { %p1913_p6 = scmp.ge.s32.totalorder %s2375_s22, 1  ;;  %p291_p7 = scmp.eq.s32.totalorder %s288_s28, 0 }
   0xe   : > { %p2501_p8 = por %p310_p5, %p309_p3  ;;  %p378_p9 = scmp.lt.s32.totalorder %s2375_s22, 3 }
   0xf   : > { %s2507_s30 = scalar_select %p291_p7, %s2363_s19, %s293_s26  }
  0x10   : > { %p379_p10 = pnand %p1913_p6, %p378_p9 }
  0x11   : > { %s2793_s4 = sld [smem:[#allocation10_spill]] (!%p379_p10)  ;;  %p430_p11 = scmp.lt.s32.totalorder (!%p379_p10), %s2367_s20, 1 }
  0x12   : > { %382 = sbr.rel (%p379_p10) target bundleno = 1323 (0x52b), region = 64  ;;  %s2379_s23 = smov (!%p379_p10), 120  }
  0x13   : > { %s2380_s24 = smov (!%p379_p10), 124   ;;  %s2382_s12 = smov (!%p379_p10), 112  }
  0x14   : > { %s2383_s13 = smov (!%p379_p10), 108   ;;  %s2388_s15 = smov (!%p379_p10), 12  }
  0x17   : > { %v2241_v0 = vld [vmem:[%s2793_s4 + $0x8] sm:$0xff]   ;;  %v2377_v1 = vmov 0.0   ;;  %v2242_v2 = vld [vmem:[%s2793_s4] sm:$0xff]   ;;  %vm2378_vm0 = vmmov 0   ;;  %s431_s16 = scalar_select %p430_p11, %s2367_s20, 1  ;;  %vm488_vm1 = vcmask 261120  }
  0x18   : > { %2042 = vmatprep.subr.bf16.mxu0 %v2377_v1  ;;  %2050 = vmatprep.subr.bf16.mxu1 %v2377_v1  ;;  %v2246_v3 = vld [vmem:[%s2779_s5 + $0x8] sm:$0xff]   ;;  %v2247_v5 = vld [vmem:[%s2779_s5] sm:$0xff]   ;;  %vm541_vm2 = vcmask 257024   ;;  %vm701_vm3 = vcmask 31744   ;;  %s2384_s4 = smov 104   ;;  %vm748_vm4 = vcmask 130048  }
  0x19   : > { %2043 = vmatpush3.bf16.msra.mxu0 %v2241_v0  ;;  %2046 = vmatprep.mubr.msk.bf16.mxu0 %vm2378_vm0, %v2377_v1  ;;  %s1985_s26 = sshll.u32 %s431_s16, 3  ;;  %v2244_v4 = vld [vmem:[%s2777_s3 + $0x8] sm:$0xff]   ;;  %s1915_s28 = sshll.u32 %s431_s16, 2  ;;  %v2245_v7 = vld [vmem:[%s2777_s3] sm:$0xff]   ;;  %vm811_vm5 = vcmask 27648   ;;  %vm943_vm6 = vcmask 60448  }
  0x1a   : > { %2044 = vmatprep.subr.bf16.mxu0 %v2377_v1  ;;  %2054 = vmatprep.mubr.msk.bf16.mxu1 %vm2378_vm0, %v2377_v1  ;;  %s441_s25 = scalar_lea.vmem %s2775_s1, %s1985_s26  ;;  %s446_s21 = scalar_lea.vmem %s2776_s2, %s1985_s26  ;;  %v1920_v10 = vld [vmem:[%s2782_s8] ss:$0 sm:$0xff]  ;;  %vm1074_vm7 = vcmask 93248   ;;  %vm1205_vm8 = vcmask 126048   ;;  %vm1336_vm9 = vcmask 158848   ;;  %vm1467_vm10 = vcmask 191648  }
  0x1b   : > { %2051 = vmatpush3.bf16.msra.mxu1 %v2246_v3  ;;  %v2243_v6 = vld [vmem:[%s441_s25] sm:$0xff]   ;;  %s436_s14 = scalar_lea.vmem %s2774_s0, %s1915_s28  ;;  %s2381_s28 = smov 116   ;;  %vm1598_vm11 = vcmask 224448   ;;  %vm1729_vm12 = vcmask 257248  }
  0x1c   : > { %2052 = vmatprep.subr.bf16.mxu1 %v2377_v1  ;;  %v2248_v8 = vld [vmem:[%s446_s21] sm:$0xff]   ;;  %s2385_s21 = smov 100   ;;  %s2386_s16 = smov 4  }
  0x1d   : > { %2045 = vmatpush3.bf16.msra.mxu0 %v2242_v2  ;;  %v622_v9 = vld [vmem:[%s436_s14] sm:$0xf]  ;;  %s2387_s26 = smov 8   ;;  %s2391_s25 = smov 24  }
  0x1e   : > { %2058 = vmatprep.subr.bf16.mxu0 %v2377_v1  ;;  %v1934_v19 = vld [vmem:[%s2781_s7] ss:$0 sm:$0xff]  ;;  %s2392_s14 = smov 28  }
  0x1f   : > { %2053 = vmatpush3.bf16.msra.mxu1 %v2247_v5  ;;  %v1927_v35 = vld [vmem:[%s2783_s9] ss:$0 sm:$0xff] }
  0x20   : > { %2047 = vmatmul.mubr.msk.bf16.vlgmr.msra.gmra.mxu0 %vm488_vm1, %v2243_v6  ;;  %2066 = vmatprep.subr.bf16.mxu1 %v2377_v1 }
  0x21   : > { %2059 = vmatpush3.bf16.msra.mxu0 %v2244_v4  ;;  %2062 = vmatprep.mubr.msk.bf16.mxu0 %vm2378_vm0, %v2377_v1 }
  0x22   : > { %2060 = vmatprep.subr.bf16.mxu0 %v2377_v1  ;;  %2055 = vmatmul.mubr.msk.bf16.vlgmr.msra.gmra.mxu1 %vm488_vm1, %v2248_v8 }
  0x23   : > { %2068 = vmatprep.mubr.msk.bf16.mxu1 %vm2378_vm0, %v2377_v1 }
  0x25   : > { %2061 = vmatpush3.bf16.msra.mxu0 %v2245_v7 }
  0x26   : > { %2072 = vmatprep.subr.bf16.mxu0 %v2377_v1 }
  0x28   : > { %2063 = vmatmul.mubr.msk.bf16.vlgmr.msra.gmra.mxu0 %vm488_vm1, %v622_v9 }
  0x29   : > { %2074 = vmatprep.mubr.msk.bf16.mxu0 %vm2378_vm0, %v2377_v1 }
  0xe0   : > { %v526_v11 = vpop.f32.mrf.mxu0 }
  0xe1   : > { %v527_v12 = vadd.f32 %v1920_v10, %v526_v11 }
  0xe2   : > { %v2048_v13 = vpop.f32.mrf.mxu0  ;;  %v605_v36 = vpop.f32.mrf.mxu1 }
  0xe3   : > { %v1987_v14 = vpack.c.bf16 %v527_v12, %v527_v12  ;;  %v606_v37 = vadd.f32 %v1927_v35, %v605_v36 }
  0xe4   : > { %v529_v15 = vpop.f32.mrf.mxu0  ;;  %v2056_v39 = vpop.f32.mrf.mxu1 }
  0xe5   : > { %542 = vst.msk [vmem:[#allocation2] sm:$0xf] %vm541_vm2, %v1987_v14  ;;  %v530_v16 = vadd.f32 %v1920_v10, %v529_v15  ;;  %v1989_v40 = vpack.c.bf16 %v606_v37, %v606_v37 }
  0xe6   : > { %v2049_v17 = vpop.f32.mrf.mxu0  ;;  %v608_v41 = vpop.f32.mrf.mxu1 }
  0xe7   : > { %v1988_v18 = vpack.c.bf16 %v530_v16, %v530_v16  ;;  %620 = vst.msk [vmem:[#allocation3] sm:$0xf] %vm541_vm2, %v1989_v40  ;;  %v609_v42 = vadd.f32 %v1927_v35, %v608_v41 }
  0xe8   : > { %v684_v20 = vpop.f32.mrf.mxu0  ;;  %v2057_v43 = vpop.f32.mrf.mxu1 }
  0xe9   : > { %543 = vst.msk [vmem:[#allocation2 + $0x4] sm:$0xf] %vm541_vm2, %v1988_v18  ;;  %v685_v21 = vadd.f32 %v1934_v19, %v684_v20  ;;  %v1990_v44 = vpack.c.bf16 %v609_v42, %v609_v42 }
  0xea   : > { %v2064_v22 = vpop.f32.mrf.mxu0 }
  0xeb   : > { %v690_v24 = vmul.f32 0.5, %v685_v21  ;;  %621 = vst.msk [vmem:[#allocation3 + $0x4] sm:$0xf] %vm541_vm2, %v1990_v44 }
  0xec   : > { %v687_v23 = vpop.f32.mrf.mxu0 }
  0xed   : > { %v691_v29 = vpack.c.bf16 %v690_v24, %v690_v24 }
  0xee   : > { %v2065_v25 = vpop.f32.mrf.mxu0 }
  0xf0   : > { %v2249_v26 = vld [vmem:[#allocation2] sm:$0xff]  }
  0xf1   : > { %v2250_v27 = vld [vmem:[#allocation2] sm:$0xff]   ;;  %956 = vrot.lane.b32.xlu1 %v2249_v26, %s2379_s23 }
  0xf2   : > { %v2251_v28 = vld [vmem:[#allocation2] sm:$0xff]   ;;  %825 = vrot.lane.b32.xlu0 %v2250_v27, %s2380_s24  ;;  %v2257_v45 = vld [vmem:[#allocation3] sm:$0xff]  }
  0xf3   : > { %v706_v30 = vsel %vm701_vm3, %v2251_v28, 0  ;;  %v2252_v31 = vld [vmem:[#allocation2] sm:$0xff]   ;;  %v2258_v46 = vld [vmem:[#allocation3] sm:$0xff]  }
  0xf4   : > { %2067 = vmatpush3.bf16.xpose.msra.mxu1 %v706_v30  ;;  %v2253_v32 = vld [vmem:[#allocation2] sm:$0xff]   ;;  %v2259_v47 = vld [vmem:[#allocation3] sm:$0xff]   ;;  %2073 = vmatpush3.bf16.msra.mxu0 %v2258_v46 }
  0xf5   : > { %2078 = vmatprep.subr.bf16.mxu1 %v2377_v1  ;;  %949 = vrot.lane.b32.xlu1 %v691_v29, %s2379_s23  ;;  %v2254_v33 = vld [vmem:[#allocation2] sm:$0xff]   ;;  %v2260_v23 = vld [vmem:[#allocation3] sm:$0xff]  }
  0xf6   : > { %818 = vrot.lane.b32.xlu0 %v691_v29, %s2380_s24  ;;  %v2255_v34 = vld [vmem:[#allocation2] sm:$0xff]   ;;  %2084 = vmatprep.subr.bf16.mxu0 %v2377_v1  ;;  %v2261_v39 = vld [vmem:[#allocation3] sm:$0xff]  }
  0xf7   : > { %v2256_v38 = vld [vmem:[#allocation2] sm:$0xff]  }
  0xf9   : > { %1080 = vrot.lane.b32.xlu1 %v691_v29, %s2381_s28 }
  0xfa   : > { %1087 = vrot.lane.b32.xlu0 %v2252_v31, %s2381_s28 }
  0xfb   : > { %2069 = vmatmul.mubr.msk.bf16.vlgmr.msra.gmra.mxu1 %vm701_vm3, %v691_v29 }
  0xfc   : > { %2080 = vmatprep.mubr.msk.bf16.mxu1 %vm2378_vm0, %v2377_v1 }
  0xfd   : > { %1211 = vrot.lane.b32.xlu1 %v691_v29, %s2382_s12 }
  0xfe   : > { %1218 = vrot.lane.b32.xlu0 %v2253_v32, %s2382_s12 }
 0x101   : > { %1342 = vrot.lane.b32.xlu1 %v691_v29, %s2383_s13 }
 0x102   : > { %1349 = vrot.lane.b32.xlu0 %v2254_v33, %s2383_s13 }
 0x105   : > { %1473 = vrot.lane.b32.xlu1 %v691_v29, %s2384_s4 }
 0x106   : > { %1480 = vrot.lane.b32.xlu0 %v2255_v34, %s2384_s4 }
 0x109   : > { %1604 = vrot.lane.b32.xlu1 %v691_v29, %s2385_s21 }
 0x10a   : > { %1611 = vrot.lane.b32.xlu0 %v2256_v38, %s2385_s21 }
 0x10d   : > { %1019 = vrot.lane.b32.xlu1 %v2259_v47, %s2379_s23  ;;  %s2389_s23 = smov 16  }
 0x10e   : > { %888 = vrot.lane.b32.xlu0 %v2257_v45, %s2380_s24  ;;  %s2390_s24 = smov 20  }
 0x163   : > { %v957_v50 = vpop.permute.xlu1 %956 }
 0x164   : > { %v826_v48 = vpop.permute.xlu0 %825  ;;  %v962_v52 = vsel %vm701_vm3, %v957_v50, 0 }
 0x165   : > { %v831_v49 = vsel %vm701_vm3, %v826_v48, 0 }
 0x166   : > { %2079 = vmatpush3.bf16.xpose.msra.mxu1 %v831_v49 }
 0x167   : > { %2090 = vmatprep.subr.bf16.mxu1 %v2377_v1  ;;  %v950_v54 = vpop.permute.xlu1 %949 }
 0x168   : > { %v819_v51 = vpop.permute.xlu0 %818 }
 0x16b   : > { %v1081_v57 = vpop.permute.xlu1 %1080 }
 0x16c   : > { %v1088_v53 = vpop.permute.xlu0 %1087 }
 0x16d   : > { %2081 = vmatmul.mubr.msk.bf16.vlgmr.msra.gmra.mxu1 %vm701_vm3, %v819_v51  ;;  %v1093_v55 = vsel %vm701_vm3, %v1088_v53, 0 }
 0x16e   : > { %2091 = vmatpush3.bf16.xpose.msra.mxu1 %v962_v52  ;;  %2092 = vmatprep.mubr.msk.bf16.mxu1 %vm2378_vm0, %v2377_v1 }
 0x16f   : > { %2102 = vmatprep.subr.bf16.mxu1 %v2377_v1  ;;  %v1212_v60 = vpop.permute.xlu1 %1211 }
 0x170   : > { %v1219_v56 = vpop.permute.xlu0 %1218 }
 0x171   : > { %v1224_v58 = vsel %vm701_vm3, %v1219_v56, 0  ;;  %v2264_v56 = vld [vmem:[#allocation3] sm:$0xff]  }
 0x173   : > { %v1343_v63 = vpop.permute.xlu1 %1342 }
 0x174   : > { %v1350_v59 = vpop.permute.xlu0 %1349 }
 0x175   : > { %2093 = vmatmul.mubr.msk.bf16.vlgmr.msra.gmra.mxu1 %vm701_vm3, %v950_v54  ;;  %v1355_v61 = vsel %vm701_vm3, %v1350_v59, 0  ;;  %v2262_v54 = vld [vmem:[#allocation3] sm:$0xff]  }
 0x176   : > { %2103 = vmatpush3.bf16.xpose.msra.mxu1 %v1093_v55  ;;  %2104 = vmatprep.mubr.msk.bf16.mxu1 %vm2378_vm0, %v2377_v1  ;;  %v2263_v55 = vld [vmem:[#allocation3] sm:$0xff]  }
 0x177   : > { %2114 = vmatprep.subr.bf16.mxu1 %v2377_v1  ;;  %v1474_v3 = vpop.permute.xlu1 %1473 }
 0x178   : > { %v1481_v62 = vpop.permute.xlu0 %1480 }
 0x179   : > { %v1486_v0 = vsel %vm701_vm3, %v1481_v62, 0 }
 0x17b   : > { %v1605_v5 = vpop.permute.xlu1 %1604 }
 0x17c   : > { %v1612_v2 = vpop.permute.xlu0 %1611 }
 0x17d   : > { %2105 = vmatmul.mubr.msk.bf16.vlgmr.msra.gmra.mxu1 %vm701_vm3, %v1081_v57  ;;  %v1617_v4 = vsel %vm701_vm3, %v1612_v2, 0 }
 0x17e   : > { %2115 = vmatpush3.bf16.xpose.msra.mxu1 %v1224_v58  ;;  %2116 = vmatprep.mubr.msk.bf16.mxu1 %vm2378_vm0, %v2377_v1 }
 0x17f   : > { %2126 = vmatprep.subr.bf16.mxu1 %v2377_v1  ;;  %v1020_v57 = vpop.permute.xlu1 %1019 }
 0x180   : > { %v889_v25 = vpop.permute.xlu0 %888 }
 0x185   : > { %2117 = vmatmul.mubr.msk.bf16.vlgmr.msra.gmra.mxu1 %vm701_vm3, %v1212_v60 }
 0x186   : > { %2127 = vmatpush3.bf16.xpose.msra.mxu1 %v1355_v61  ;;  %2128 = vmatprep.mubr.msk.bf16.mxu1 %vm2378_vm0, %v2377_v1 }
 0x187   : > { %2138 = vmatprep.subr.bf16.mxu1 %v2377_v1 }
 0x18d   : > { %2129 = vmatmul.mubr.msk.bf16.vlgmr.msra.gmra.mxu1 %vm701_vm3, %v1343_v63 }
 0x18e   : > { %2139 = vmatpush3.bf16.xpose.msra.mxu1 %v1486_v0  ;;  %2140 = vmatprep.mubr.msk.bf16.mxu1 %vm2378_vm0, %v2377_v1 }
 0x18f   : > { %2150 = vmatprep.subr.bf16.mxu1 %v2377_v1 }
 0x195   : > { %2141 = vmatmul.mubr.msk.bf16.vlgmr.msra.gmra.mxu1 %vm701_vm3, %v1474_v3 }
 0x196   : > { %2151 = vmatpush3.bf16.xpose.msra.mxu1 %v1617_v4  ;;  %2152 = vmatprep.mubr.msk.bf16.mxu1 %vm2378_vm0, %v2377_v1 }
 0x197   : > { %2162 = vmatprep.subr.bf16.mxu1 %v2377_v1 }
 0x19d   : > { %2153 = vmatmul.mubr.msk.bf16.vlgmr.msra.gmra.mxu1 %vm701_vm3, %v1605_v5 }
 0x19e   : > { %2166 = vmatprep.mubr.msk.bf16.mxu1 %vm2378_vm0, %v2377_v1 }
 0x1bb   : > { %v742_v6 = vpop.f32.mrf.mxu1 }
 0x1bc   : > { %v749_v7 = vsel %vm748_vm4, %v742_v6, -inf }
 0x1bd   : > { %750 = vmax.xlane.f32.xlu0 %v749_v7  ;;  %v2070_v8 = vpop.f32.mrf.mxu1 }
 0x1bf   : > { %v745_v9 = vpop.f32.mrf.mxu1 }
 0x1c1   : > { %v2071_v10 = vpop.f32.mrf.mxu1 }
 0x22d   : > { %v2630_v11 = vpop.f32.mrf.mxu1 }
 0x22e   : > { %v873_v12 = vsel %vm748_vm4, %v2630_v11, -inf }
 0x22f   : > { %874 = vmax.xlane.f32.xlu1 %v873_v12  ;;  %v2082_v13 = vpop.f32.mrf.mxu1 }
 0x231   : > { %v870_v14 = vpop.f32.mrf.mxu1 }
 0x233   : > { %v2083_v15 = vpop.f32.mrf.mxu1 }
 0x235   : > { %v2634_v16 = vpop.f32.mrf.mxu1 }
 0x236   : > { %v1004_v17 = vsel %vm748_vm4, %v2634_v16, -inf }
 0x237   : > { %1005 = vmax.xlane.f32.xlu0 %v1004_v17  ;;  %v2094_v18 = vpop.f32.mrf.mxu1 }
 0x239   : > { %v1001_v19 = vpop.f32.mrf.mxu1 }
 0x23b   : > { %v2095_v20 = vpop.f32.mrf.mxu1 }
 0x23d   : > { %v2638_v21 = vpop.f32.mrf.mxu1 }
 0x23e   : > { %v1135_v22 = vsel %vm748_vm4, %v2638_v21, -inf }
 0x23f   : > { %1136 = vmax.xlane.f32.xlu0 %v1135_v22  ;;  %v2106_v24 = vpop.f32.mrf.mxu1 }
 0x240   : > { %1150 = vrot.lane.b32.xlu1 %v2260_v23, %s2381_s28 }
 0x241   : > { %v1132_v26 = vpop.f32.mrf.mxu1 }
 0x243   : > { %v2107_v27 = vpop.f32.mrf.mxu1 }
 0x245   : > { %v2643_v29 = vpop.f32.mrf.mxu1 }
 0x246   : > { %v751_v28 = vpop.xlane.xlu0 %750  ;;  %v1266_v50 = vsel %vm748_vm4, %v2643_v29, -inf }
 0x247   : > { %v752_v30 = vsub.f32 %v742_v6, %v751_v28  ;;  %v2118_v31 = vpop.f32.mrf.mxu1 }
 0x249   : > { %v753_v32 = vmul.f32 1.442695, %v752_v30  ;;  %v1263_v33 = vpop.f32.mrf.mxu1 }
 0x24b   : > { %2267 = vpow2.f32 %v753_v32  ;;  %v2119_v34 = vpop.f32.mrf.mxu1 }
 0x24d   : > { %v2645_v35 = vpop.f32.mrf.mxu1 }
 0x24e   : > { %v1397_v51 = vsel %vm748_vm4, %v2645_v35, -inf }
 0x24f   : > { %v2130_v36 = vpop.f32.mrf.mxu1 }
 0x251   : > { %v1394_v37 = vpop.f32.mrf.mxu1 }
 0x253   : > { %v2131_v38 = vpop.f32.mrf.mxu1 }
 0x255   : > { %1281 = vrot.lane.b32.xlu0 %v2261_v39, %s2382_s12  ;;  %v2648_v40 = vpop.f32.mrf.mxu1 }
 0x256   : > { %v1528_v53 = vsel %vm748_vm4, %v2648_v40, -inf }
 0x257   : > { %v2142_v42 = vpop.f32.mrf.mxu1 }
 0x258   : > { %v2650_v41 = vpop.eup %2267 }
 0x259   : > { %v758_v43 = vpack.c.bf16 %v2650_v41, %v2650_v41  ;;  %v1525_v44 = vpop.f32.mrf.mxu1  ;;  %v755_v42 = vsel %vm748_vm4, %v2650_v41, 0.0 }
 0x25b   : > { %2075 = vmatmul.mubr.msk.bf16.vlgmr.msra.gmra.mxu0 %vm748_vm4, %v758_v43  ;;  %v2143_v45 = vpop.f32.mrf.mxu1 }
 0x25c   : > { %2085 = vmatpush3.bf16.msra.mxu0 %v889_v25  ;;  %2086 = vmatprep.mubr.msk.bf16.mxu0 %vm2378_vm0, %v2377_v1 }
 0x25d   : > { %2096 = vmatprep.subr.bf16.mxu0 %v2377_v1  ;;  %v2658_v46 = vpop.f32.mrf.mxu1 }
 0x25e   : > { %v1659_v52 = vsel %vm748_vm4, %v2658_v46, -inf }
 0x25f   : > { %v2154_v47 = vpop.f32.mrf.mxu1 }
 0x261   : > { %v1656_v48 = vpop.f32.mrf.mxu1 }
 0x263   : > { %v2155_v49 = vpop.f32.mrf.mxu1 }
 0x264   : > { %1267 = vmax.xlane.f32.xlu1 %v1266_v50 }
 0x268   : > { %1398 = vmax.xlane.f32.xlu1 %v1397_v51 }
 0x26c   : > { %1660 = vmax.xlane.f32.xlu1 %v1659_v52 }
 0x274   : > { %1529 = vmax.xlane.f32.xlu0 %v1528_v53 }
 0x27d   : > { %1412 = vrot.lane.b32.xlu1 %v2262_v54, %s2383_s13 }
 0x28a   : > { %1543 = vrot.lane.b32.xlu0 %v2263_v55, %s2384_s4 }
 0x28e   : > { %1674 = vrot.lane.b32.xlu0 %v2264_v56, %s2385_s21  ;;  %s427_s21 = sand.u32 1, %s2359_s18  }
 0x2b8   : > { %v875_v58 = vpop.xlane.xlu1 %874 }
 0x2b9   : > { %v876_v59 = vsub.f32 %v2630_v11, %v875_v58 }
 0x2bb   : > { %v877_v60 = vmul.f32 1.442695, %v876_v59 }
 0x2bc   : > { %v1151_v10 = vpop.permute.xlu1 %1150 }
 0x2bd   : > { %2269 = vpow2.f32 %v877_v60 }
 0x2c0   : > { %v1006_v61 = vpop.xlane.xlu0 %1005 }
 0x2c1   : > { %v1007_v62 = vsub.f32 %v2634_v16, %v1006_v61 }
 0x2c3   : > { %v1008_v63 = vmul.f32 1.442695, %v1007_v62 }
 0x2c5   : > { %2271 = vpow2.f32 %v1008_v63 }
 0x2c8   : > { %v1137_v0 = vpop.xlane.xlu0 %1136 }
 0x2c9   : > { %v1138_v2 = vsub.f32 %v2638_v21, %v1137_v0 }
 0x2ca   : > { %v2270_v3 = vpop.eup %2269 }
 0x2cb   : > { %v1139_v4 = vmul.f32 1.442695, %v1138_v2  ;;  %v879_v5 = vsel %vm748_vm4, %v2270_v3, 0.0  ;;  %v882_v6 = vpack.c.bf16 %v2270_v3, %v2270_v3 }
 0x2cc   : > { %880 = vadd.xlane.f32.xlu1 %v879_v5  ;;  %v1282_v14 = vpop.permute.xlu0 %1281 }
 0x2cd   : > { %2273 = vpow2.f32 %v1139_v4  ;;  %2087 = vmatmul.mubr.msk.bf16.vlgmr.msra.gmra.mxu0 %vm748_vm4, %v882_v6 }
 0x2ce   : > { %2097 = vmatpush3.bf16.msra.mxu0 %v1020_v57  ;;  %2098 = vmatprep.mubr.msk.bf16.mxu0 %vm2378_vm0, %v2377_v1 }
 0x2cf   : > { %2108 = vmatprep.subr.bf16.mxu0 %v2377_v1 }
 0x2d2   : > { %v2272_v7 = vpop.eup %2271 }
 0x2d3   : > { %v1010_v8 = vsel %vm748_vm4, %v2272_v7, 0.0  ;;  %v1013_v9 = vpack.c.bf16 %v2272_v7, %v2272_v7 }
 0x2d4   : > { %1011 = vadd.xlane.f32.xlu0 %v1010_v8 }
 0x2d5   : > { %2099 = vmatmul.mubr.msk.bf16.vlgmr.msra.gmra.mxu0 %vm748_vm4, %v1013_v9 }
 0x2d6   : > { %2109 = vmatpush3.bf16.msra.mxu0 %v1151_v10  ;;  %2110 = vmatprep.mubr.msk.bf16.mxu0 %vm2378_vm0, %v2377_v1 }
 0x2d7   : > { %2120 = vmatprep.subr.bf16.mxu0 %v2377_v1 }
 0x2da   : > { %v2274_v11 = vpop.eup %2273 }
 0x2db   : > { %v1141_v12 = vsel %vm748_vm4, %v2274_v11, 0.0  ;;  %v1144_v13 = vpack.c.bf16 %v2274_v11, %v2274_v11 }
 0x2dc   : > { %1142 = vadd.xlane.f32.xlu0 %v1141_v12 }
 0x2dd   : > { %2111 = vmatmul.mubr.msk.bf16.vlgmr.msra.gmra.mxu0 %vm748_vm4, %v1144_v13 }
 0x2de   : > { %2121 = vmatpush3.bf16.msra.mxu0 %v1282_v14  ;;  %2122 = vmatprep.mubr.msk.bf16.mxu0 %vm2378_vm0, %v2377_v1 }
 0x2df   : > { %2132 = vmatprep.subr.bf16.mxu0 %v2377_v1 }
 0x2ed   : > { %v1268_v15 = vpop.xlane.xlu1 %1267 }
 0x2ee   : > { %v1269_v16 = vsub.f32 %v2643_v29, %v1268_v15 }
 0x2f0   : > { %v1270_v17 = vmul.f32 1.442695, %v1269_v16 }
 0x2f1   : > { %v1399_v18 = vpop.xlane.xlu1 %1398 }
 0x2f2   : > { %2275 = vpow2.f32 %v1270_v17  ;;  %v1400_v19 = vsub.f32 %v2645_v35, %v1399_v18 }
 0x2f4   : > { %v1401_v20 = vmul.f32 1.442695, %v1400_v19 }
 0x2f5   : > { %v1661_v21 = vpop.xlane.xlu1 %1660 }
 0x2f6   : > { %2277 = vpow2.f32 %v1401_v20  ;;  %v1662_v22 = vsub.f32 %v2658_v46, %v1661_v21 }
 0x2f8   : > { %v1663_v23 = vmul.f32 1.442695, %v1662_v22 }
 0x2f9   : > { %v1413_v30 = vpop.permute.xlu1 %1412 }
 0x2fa   : > { %2279 = vpow2.f32 %v1663_v23 }
 0x2fd   : > { %v1530_v24 = vpop.xlane.xlu0 %1529 }
 0x2fe   : > { %v1531_v25 = vsub.f32 %v2648_v40, %v1530_v24 }
 0x2ff   : > { %v2276_v26 = vpop.eup %2275 }
 0x300   : > { %v1532_v27 = vmul.f32 1.442695, %v1531_v25  ;;  %v1272_v28 = vsel %vm748_vm4, %v2276_v26, 0.0  ;;  %v1275_v29 = vpack.c.bf16 %v2276_v26, %v2276_v26 }
 0x301   : > { %1273 = vadd.xlane.f32.xlu1 %v1272_v28  ;;  %v1544_v36 = vpop.permute.xlu0 %1543 }
 0x302   : > { %2281 = vpow2.f32 %v1532_v27  ;;  %2123 = vmatmul.mubr.msk.bf16.vlgmr.msra.gmra.mxu0 %vm748_vm4, %v1275_v29 }
 0x303   : > { %v2278_v31 = vpop.eup %2277  ;;  %2133 = vmatpush3.bf16.msra.mxu0 %v1413_v30  ;;  %2134 = vmatprep.mubr.msk.bf16.mxu0 %vm2378_vm0, %v2377_v1 }
 0x304   : > { %v1403_v32 = vsel %vm748_vm4, %v2278_v31, 0.0  ;;  %2144 = vmatprep.subr.bf16.mxu0 %v2377_v1  ;;  %v1406_v35 = vpack.c.bf16 %v2278_v31, %v2278_v31 }
 0x305   : > { %1404 = vadd.xlane.f32.xlu0 %v1403_v32  ;;  %v1675_v40 = vpop.permute.xlu0 %1674  ;;  %v2265_v32 = vld [vmem:[%s2780_s6 + $0x8] sm:$0xff]  }
 0x306   : > { %2163 = vmatpush3.bf16.msra.mxu1 %v2265_v32 }
 0x307   : > { %v2280_v33 = vpop.eup %2279  ;;  %2164 = vmatprep.subr.bf16.mxu1 %v2377_v1 }
 0x308   : > { %v1665_v34 = vsel %vm748_vm4, %v2280_v33, 0.0  ;;  %v1668_v43 = vpack.c.bf16 %v2280_v33, %v2280_v33 }
 0x309   : > { %1666 = vadd.xlane.f32.xlu0 %v1665_v34 }
 0x30a   : > { %2135 = vmatmul.mubr.msk.bf16.vlgmr.msra.gmra.mxu0 %vm748_vm4, %v1406_v35  ;;  %v2266_v35 = vld [vmem:[%s2780_s6] sm:$0xff]  }
 0x30b   : > { %2145 = vmatpush3.bf16.msra.mxu0 %v1544_v36  ;;  %2146 = vmatprep.mubr.msk.bf16.mxu0 %vm2378_vm0, %v2377_v1 }
 0x30c   : > { %2156 = vmatprep.subr.bf16.mxu0 %v2377_v1  ;;  %2165 = vmatpush3.bf16.msra.mxu1 %v2266_v35 }
 0x30f   : > { %v2282_v37 = vpop.eup %2281 }
 0x310   : > { %v1534_v38 = vsel %vm748_vm4, %v2282_v37, 0.0  ;;  %v1537_v39 = vpack.c.bf16 %v2282_v37, %v2282_v37 }
 0x311   : > { %1535 = vadd.xlane.f32.xlu1 %v1534_v38 }
 0x312   : > { %2147 = vmatmul.mubr.msk.bf16.vlgmr.msra.gmra.mxu0 %vm748_vm4, %v1537_v39 }
 0x313   : > { %2157 = vmatpush3.bf16.msra.mxu0 %v1675_v40  ;;  %2158 = vmatprep.mubr.msk.bf16.mxu0 %vm2378_vm0, %v2377_v1 }
 0x315   : > { %756 = vadd.xlane.f32.xlu1 %v755_v42 }
 0x31a   : > { %2159 = vmatmul.mubr.msk.bf16.vlgmr.msra.gmra.mxu0 %vm748_vm4, %v1668_v43 }
 0x31b   : > { %v802_v44 = vpop.f32.mrf.mxu0 }
 0x31d   : > { %v2076_v45 = vpop.f32.mrf.mxu0 }
 0x31f   : > { %v805_v46 = vpop.f32.mrf.mxu0 }
 0x321   : > { %v2077_v47 = vpop.f32.mrf.mxu0 }
 0x355   : > { %v881_v48 = vpop.xlane.xlu1 %880 }
 0x356   : > { %2283 = vrcp.f32 %v881_v48 }
 0x35d   : > { %v1012_v49 = vpop.xlane.xlu0 %1011 }
 0x35e   : > { %2285 = vrcp.f32 %v1012_v49 }
 0x363   : > { %v2284_v50 = vpop.eup %2283 }
 0x365   : > { %v1143_v51 = vpop.xlane.xlu0 %1142 }
 0x366   : > { %2287 = vrcp.f32 %v1143_v51 }
 0x36b   : > { %v2286_v57 = vpop.eup %2285 }
 0x373   : > { %v2288_v3 = vpop.eup %2287 }
 0x38a   : > { %v1274_v59 = vpop.xlane.xlu1 %1273 }
 0x38d   : > { %v928_v52 = vpop.f32.mrf.mxu0 }
 0x38e   : > { %v935_v53 = vmul.f32 %v2284_v50, %v928_v52  ;;  %v1405_v14 = vpop.xlane.xlu0 %1404 }
 0x38f   : > { %v2088_v54 = vpop.f32.mrf.mxu0 }
 0x390   : > { %v1991_v55 = vpack.c.bf16 %v935_v53, %v935_v53  ;;  %v1977_v54 = vld [vmem:[%s2784_s10] ss:$0 sm:$0xff] }
 0x391   : > { %v931_v41 = vpop.f32.mrf.mxu0 }
 0x392   : > { %940 = vrot.lane.b32.xlu0 %v1991_v55, %s2386_s16  ;;  %v1667_v23 = vpop.xlane.xlu0 %1666  ;;  %s1914_s16 = sshll.u32 %s427_s21, 3 }
 0x393   : > { %v2089_v56 = vpop.f32.mrf.mxu0 }
 0x395   : > { %v1059_v58 = vpop.f32.mrf.mxu0 }
 0x396   : > { %v1066_v60 = vmul.f32 %v2286_v57, %v1059_v58 }
 0x397   : > { %v2100_v61 = vpop.f32.mrf.mxu0 }
 0x398   : > { %v1992_v62 = vpack.c.bf16 %v1066_v60, %v1066_v60 }
 0x399   : > { %v1062_v63 = vpop.f32.mrf.mxu0 }
 0x39a   : > { %v1536_v0 = vpop.xlane.xlu1 %1535  ;;  %1071 = vrot.lane.b32.xlu1 %v1992_v62, %s2387_s26 }
 0x39b   : > { %v2101_v2 = vpop.f32.mrf.mxu0 }
 0x39d   : > { %v1190_v4 = vpop.f32.mrf.mxu0 }
 0x39e   : > { %v1197_v5 = vmul.f32 %v2288_v3, %v1190_v4  ;;  %v757_v6 = vpop.xlane.xlu1 %756 }
 0x39f   : > { %2289 = vrcp.f32 %v757_v6  ;;  %v2112_v7 = vpop.f32.mrf.mxu0 }
 0x3a0   : > { %v1993_v8 = vpack.c.bf16 %v1197_v5, %v1197_v5  ;;  %2291 = vrcp.f32 %v1274_v59 }
 0x3a1   : > { %v1193_v9 = vpop.f32.mrf.mxu0  ;;  %2293 = vrcp.f32 %v1405_v14 }
 0x3a2   : > { %1202 = vrot.lane.b32.xlu1 %v1993_v8, %s2388_s15  ;;  %2295 = vrcp.f32 %v1536_v0 }
 0x3a3   : > { %v2113_v10 = vpop.f32.mrf.mxu0  ;;  %2297 = vrcp.f32 %v1667_v23 }
 0x3ac   : > { %v2290_v11 = vpop.eup %2289 }
 0x3ad   : > { %v809_v12 = vmul.f32 %v2290_v11, %v802_v44  ;;  %v2292_v15 = vpop.eup %2291 }
 0x3ae   : > { %v2294_v22 = vpop.eup %2293 }
 0x3af   : > { %v810_v13 = vpack.c.bf16 %v809_v12, %v809_v12  ;;  %v2296_v30 = vpop.eup %2295 }
 0x3b0   : > { %v2298_v39 = vpop.eup %2297 }
 0x3b1   : > { %812 = vst.msk [vmem:[#allocation4] sm:$0xf] %vm811_vm5, %v810_v13 }
 0x3c2   : > { %v1321_v16 = vpop.f32.mrf.mxu0 }
 0x3c3   : > { %v1328_v17 = vmul.f32 %v2292_v15, %v1321_v16 }
 0x3c4   : > { %v2124_v18 = vpop.f32.mrf.mxu0 }
 0x3c5   : > { %v1994_v19 = vpack.c.bf16 %v1328_v17, %v1328_v17 }
 0x3c6   : > { %v1324_v20 = vpop.f32.mrf.mxu0 }
 0x3c7   : > { %1333 = vrot.lane.b32.xlu0 %v1994_v19, %s2389_s23  ;;  %s1982_s23 = sshll.u32 %s2367_s20, 7 }
 0x3c8   : > { %v2125_v21 = vpop.f32.mrf.mxu0  ;;  %s2727_s4 = scalar_lea.hbm %s2785_s11, %s1982_s23 }
 0x3ca   : > { %v1452_v24 = vpop.f32.mrf.mxu0 }
 0x3cb   : > { %v1459_v25 = vmul.f32 %v2294_v22, %v1452_v24 }
 0x3cc   : > { %v2136_v26 = vpop.f32.mrf.mxu0 }
 0x3cd   : > { %v1995_v27 = vpack.c.bf16 %v1459_v25, %v1459_v25 }
 0x3ce   : > { %v1455_v28 = vpop.f32.mrf.mxu0 }
 0x3cf   : > { %1464 = vrot.lane.b32.xlu1 %v1995_v27, %s2390_s24  ;;  %s429_s24 = scalar_lea.vmem [#allocation5], %s1914_s16 }
 0x3d0   : > { %v2137_v29 = vpop.f32.mrf.mxu0  ;;  %s1814_s28 = sshll.u32 %s429_s24, 4  ;;  %s2729_s28 = int_to_ptr.vmem [resolvable:$true] %s1814_s28 }
 0x3d1   : > { %s2299_s20 = scalar_lea.vmem %s2729_s28, 128 }
 0x3d2   : > { %v1583_v31 = vpop.f32.mrf.mxu0  ;;  %p2300_p12 = scmp.ne.s32.totalorder %s2729_s28, %s2299_s20 }
 0x3d3   : > { %v1590_v33 = vmul.f32 %v2296_v30, %v1583_v31 }
 0x3d4   : > { %v2148_v34 = vpop.f32.mrf.mxu0  ;;  %p2301_p13 = pnand %p2300_p12, %p2494_p4 }
 0x3d5   : > { %v1996_v36 = vpack.c.bf16 %v1590_v33, %v1590_v33 }
 0x3d6   : > { %v1586_v37 = vpop.f32.mrf.mxu0  ;;  %p2302_p0 = pneg %p2301_p13 }
 0x3d7   : > { %1595 = vrot.lane.b32.xlu0 %v1996_v36, %s2391_s25  ;;  %s1800_s25 = scalar_lea.sflag [#allocation6], %s427_s21 }
 0x3d8   : > { %v2149_v38 = vpop.f32.mrf.mxu0 }
 0x3da   : > { %v1714_v40 = vpop.f32.mrf.mxu0 }
 0x3db   : > { %v1721_v42 = vmul.f32 %v2298_v39, %v1714_v40 }
 0x3dc   : > { %v2160_v43 = vpop.f32.mrf.mxu0 }
 0x3dd   : > { %v1997_v44 = vpack.c.bf16 %v1721_v42, %v1721_v42 }
 0x3de   : > { %v1717_v45 = vpop.f32.mrf.mxu0 }
 0x3df   : > { %1726 = vrot.lane.b32.xlu1 %v1997_v44, %s2392_s14  ;;  %s2393_s14 = smov [#allocation5]  }
 0x3e0   : > { %v2161_v46 = vpop.f32.mrf.mxu0  ;;  %s2303_s16 = sshll.u32 %s2393_s14, 4  ;;  %s2304_s16 = int_to_ptr.vmem [resolvable:$false] %s2303_s16 }
 0x3e1   : > { %s2305_s26 = scalar_lea.vmem %s2304_s16, 256  ;;  %p2306_p1 = scmp.lt.s32.totalorder %s2729_s28, %s2304_s16 }
 0x3e2   : > { %p2307_p2 = scmp.lt.s32.totalorder %s2305_s26, %s2299_s20 }
 0x3e4   : > { %p2308_p3 = por %p2307_p2, %p2306_p1 }
 0x3e6   : > { %p2309_p5 = pnand %p2308_p3, %p2302_p0 }
 0x404   : > { %v941_v47 = vpop.permute.xlu0 %940 }
 0x405   : > { %944 = vst.msk [vmem:[#allocation4] sm:$0xf] %vm943_vm6, %v941_v47 }
 0x40c   : > { %v1072_v48 = vpop.permute.xlu1 %1071 }
 0x40d   : > { %1075 = vst.msk [vmem:[#allocation4] sm:$0xf] %vm1074_vm7, %v1072_v48 }
 0x414   : > { %v1203_v1 = vpop.permute.xlu1 %1202 }
 0x415   : > { %1206 = vst.msk [vmem:[#allocation4] sm:$0xf] %vm1205_vm8, %v1203_v1 }
 0x439   : > { %v1334_v49 = vpop.permute.xlu0 %1333 }
 0x43a   : > { %1337 = vst.msk [vmem:[#allocation4] sm:$0xf] %vm1336_vm9, %v1334_v49 }
 0x441   : > { %v1465_v50 = vpop.permute.xlu1 %1464 }
 0x442   : > { %1468 = vst.msk [vmem:[#allocation4] sm:$0xf] %vm1467_vm10, %v1465_v50 }
 0x449   : > { %v1596_v51 = vpop.permute.xlu0 %1595 }
 0x44a   : > { %1599 = vst.msk [vmem:[#allocation4] sm:$0xf] %vm1598_vm11, %v1596_v51 }
 0x451   : > { %v1727_v52 = vpop.permute.xlu1 %1726 }
 0x452   : > { %1730 = vst.msk [vmem:[#allocation4] sm:$0xf] %vm1729_vm12, %v1727_v52 }
 0x459   : > { %v1731_v53 = vld [vmem:[#allocation4] sm:$0xf] }
 0x45a   : > { %2167 = vmatmul.mubr.msk.bf16.vlgmr.msra.gmra.mxu1 %vm488_vm1, %v1731_v53 }
 0x51a   : > { %v1792_v55 = vpop.f32.mrf.mxu1 }
 0x51b   : > { %v1793_v41 = vadd.f32 %v1977_v54, %v1792_v55 }
 0x51c   : > { %v2168_v56 = vpop.f32.mrf.mxu1 }
 0x51d   : > { %1798 = vst.msk [vmem:[%s429_s24] sm:$0xff] %vm488_vm1, %v1793_v41 }
 0x51e   : > { %v1795_v57 = vpop.f32.mrf.mxu1 }
 0x51f   : > { %2312 = shalt.err (!%p2309_p5)
}
 0x520   : > { %s2313_s15 = scalar_lea.hbm %s2727_s4, 128  ;;  %s2317_s24 = scalar_lea.hbm %s2785_s11, 256 }
 0x521   : > { %p2314_p6 = scmp.ne.s32.totalorder %s2727_s4, %s2313_s15  ;;  %p2318_p10 = scmp.lt.s32.totalorder %s2727_s4, %s2785_s11 }
 0x522   : > { %p2319_p11 = scmp.lt.s32.totalorder %s2317_s24, %s2313_s15 }
 0x523   : > { %p2315_p7 = pnand %p2314_p6, %p2494_p4 }
 0x524   : > { %p2320_p12 = por %p2319_p11, %p2318_p10 }
 0x525   : > { %p2316_p9 = pneg %p2315_p7 }
 0x527   : > { %p2321_p13 = pnand %p2320_p12, %p2316_p9 }
 0x529   : > { %2324 = shalt.err (!%p2321_p13)
}
 0x52a   : > { %2170 = dma.vmem_to_hbm [thread:$0]  (%p2494_p4), %s2729_s28, 128, %s2727_s4, %s1800_s25   ;;  %v2169_v58 = vpop.f32.mrf.mxu1 }
 0x52b PF: > { %p2176_p0 = scmp.ge.s32.totalorder %s2375_s22, 2  ;;  %s1826_s20 = sand.u32 1, %s2355_s17  }
 0x52c   : > { %s1827_s14 = scalar_lea.sflag [#allocation6], %s1826_s20 }
 0x52d   : > { %p2173_p1 = pnand %p2176_p0, %p2501_p8 }
 0x52f   : > { %p2174_p2 = pneg %p2173_p1 }
 0x531   : > { %2350 = dma.done.wait (%p2174_p2), %s1827_s14, 128  }
 0x532   : > { %2352 = vsyncadd (%p2174_p2), %s1827_s14, 4294967168  ;;  %s24_s22 = sadd.s32 1, %s2375_s22   ;;  %s2794_s20 = sld [smem:[#allocation8_spill]] }
 0x533   : > { %p21_p3 = scmp.ge.s32.totalorder %s24_s22, 4   ;;  %s2795_s21 = sld [smem:[#allocation9_spill]] }
 0x534   : > { %s2796_s17 = smov %s2359_s18  ;;  %s2797_s18 = smov %s2363_s19 }
 0x535   : > { %s2798_s19 = smov %s2507_s30  ;;  %23 = sbr.rel (!%p21_p3) target bundleno = 6 (0x6), region = 109 }
 0x53a   :  { %1832 = vsyncpa [#allocation6], 1 }
 0x53b   :  { %1834 = vsyncpa [#allocation6 + $0x1], 1 }

</bundles_post_ra>
